<compile_context>
chip_gen: v6e
topology: v6e:2x2x1
jax: 0.10.0
libtpu: 0.0.40
codegen_flags: <defaults>
</compile_context>

<pallas_src>
import functools

import jax
import jax.numpy as jnp
from jax.experimental import pallas as pl
from jax.experimental.pallas import tpu as pltpu


# ------------------------------- small helpers ------------------------------ #

TK_MAX = 4096          # K-tile (reduction) cap
TN_MAX = 1280          # N-tile cap: keeps nj >= 2 on the big production layers (v7x 2-TC)
BIG_DIM_ALIGN = 2048   # pad very wide dims to this so tk=4096/2048 divides cleanly


def _round_up(x, m):
    return (x + m - 1) // m * m


def _pick_tile(dim, max_tile, step):
    """Largest multiple of `step` that divides `dim` and is <= max_tile (dim % step == 0)."""
    t = min(max_tile, dim)
    t = (t // step) * step
    while dim % t != 0:
        t -= step
    return t


def _pad_feature_dim(d):
    dp = _round_up(d, 128)
    if dp > 8192:
        # e.g. 24200 -> 24576 (~1% extra bytes) so tk stays maximal instead of degrading
        dp = _round_up(d, BIG_DIM_ALIGN)
    return dp


# ----------------------------- Pallas kernels ------------------------------ #

def _linear_elu_kernel(x_ref, w_ref, b_ref, o_ref, acc_ref, *, apply_elu):
    # x_ref:  (Bp, Kp) bf16, fully VMEM-resident across the whole grid
    # w_ref:  (1, 1, tk, tn) bf16, one contiguous tile-major weight block
    # b_ref:  (1, tn) f32
    # o_ref:  (Bp, tn) out dtype (bf16 for hidden layers, f32 for the last)
    # acc_ref:(Bp, tn) f32 VMEM scratch, resident across the K sweep
    k = pl.program_id(1)
    tk = w_ref.shape[2]

    @pl.when(k == 0)
    def _init():
        acc_ref[...] = jnp.zeros_like(acc_ref)

    xk = x_ref[:, pl.ds(pl.multiple_of(k * tk, 128), tk)]
    acc_ref[...] += jnp.dot(xk, w_ref[0, 0], preferred_element_type=jnp.float32)

    @pl.when(k == pl.num_programs(1) - 1)
    def _finalize():
        y = acc_ref[...] + b_ref[...]
        if apply_elu:
            # ELU (alpha=1), computed in float32: x if x > 0 else exp(x) - 1
            y = jnp.where(y > 0.0, y, jnp.exp(jnp.minimum(y, 0.0)) - 1.0)
        o_ref[...] = y.astype(o_ref.dtype)


def linear_elu(x, w_tiles, b, *, apply_elu=True, out_dtype=jnp.bfloat16):
    """y = ELU(x @ W + b) with tile-major bf16 weight streaming and f32 accumulation.

    x:       (Bp, Kp) bf16
    w_tiles: (nk, nj, tk, tn) bf16 (tile-major relayout of the (Kp, Np) weight)
    b:       (Np,) f32
    """
    Bp, Kp = x.shape
    nk, nj, tk, tn = w_tiles.shape
    Np = nj * tn
    assert Kp == nk * tk, (Kp, nk, tk)
    assert Bp % 8 == 0 and Kp % 128 == 0 and tn % 128 == 0 and tk % 128 == 0
    b2 = b.reshape(1, Np)

    # VMEM budget: 2x weight tile (double buffered) + 2x resident activation block
    #              + 2x output tile + accumulator + bias tiles, plus headroom.
    wt_bytes = tk * tn * w_tiles.dtype.itemsize
    x_bytes = Bp * Kp * x.dtype.itemsize
    o_bytes = Bp * tn * jnp.dtype(out_dtype).itemsize
    vmem_need = 2 * wt_bytes + 2 * x_bytes + 2 * o_bytes + Bp * tn * 4 + 2 * tn * 4
    vmem_limit = max(16 << 20, min(int(vmem_need * 1.25) + (4 << 20), 64 << 20))

    flops = 2 * Bp * Kp * Np
    bytes_accessed = (w_tiles.size * w_tiles.dtype.itemsize
                      + x_bytes + Bp * Np * jnp.dtype(out_dtype).itemsize + Np * 4)

    kernel = functools.partial(_linear_elu_kernel, apply_elu=apply_elu)
    return pl.pallas_call(
        kernel,
        out_shape=jax.ShapeDtypeStruct((Bp, Np), out_dtype),
        grid_spec=pltpu.PrefetchScalarGridSpec(
            num_scalar_prefetch=0,
            grid=(nj, nk),                                            # reduction axis last
            in_specs=[
                pl.BlockSpec((Bp, Kp), lambda j, k: (0, 0)),          # resident activations
                pl.BlockSpec((1, 1, tk, tn), lambda j, k: (k, j, 0, 0)),  # contiguous W tile
                pl.BlockSpec((1, tn), lambda j, k: (0, j)),           # bias tile
            ],
            out_specs=pl.BlockSpec((Bp, tn), lambda j, k: (0, j)),
            scratch_shapes=[pltpu.VMEM((Bp, tn), jnp.float32)],
        ),
        compiler_params=pltpu.CompilerParams(
            dimension_semantics=("parallel", "arbitrary"),
            vmem_limit_bytes=vmem_limit),
        cost_estimate=pl.CostEstimate(
            flops=flops,
            transcendentals=Bp * Np if apply_elu else 0,
            bytes_accessed=bytes_accessed),
    )(x, w_tiles, b2)


def _softmax_rows_kernel(x_ref, o_ref):
    # softmax over the last (lane) axis of a (tr, Cp) block; padding lanes hold -1e30
    x = x_ref[...]
    m = jnp.max(x, axis=-1, keepdims=True)
    e = jnp.exp(x - m)
    s = jnp.sum(e, axis=-1, keepdims=True)
    o_ref[...] = (e / s).astype(o_ref.dtype)


def softmax_rows(x2d):
    """Row-wise softmax of (R, C) with the lane axis padded to 128 (padding -> exp == 0)."""
    R, C = x2d.shape
    Rp = _round_up(R, 8)
    Cp = _round_up(C, 128)
    xp = jnp.full((Rp, Cp), -1e30, dtype=jnp.float32)
    xp = xp.at[:R, :C].set(x2d.astype(jnp.float32))

    tr = _pick_tile(Rp, 256, 8)
    out = pl.pallas_call(
        _softmax_rows_kernel,
        out_shape=jax.ShapeDtypeStruct((Rp, Cp), jnp.float32),
        grid_spec=pltpu.PrefetchScalarGridSpec(
            num_scalar_prefetch=0,
            grid=(Rp // tr,),
            in_specs=[pl.BlockSpec((tr, Cp), lambda i: (i, 0))],
            out_specs=pl.BlockSpec((tr, Cp), lambda i: (i, 0)),
        ),
        compiler_params=pltpu.CompilerParams(dimension_semantics=("parallel",)),
    )(xp)
    return out[:R, :C]


# ------------------------------ Model wrapper ------------------------------ #

def init_params(key, in_dim, dims):
    """Synthetic parameters, zero-padded to tile-friendly sizes and relaid out tile-major.

    Each entry is (w_tiles, b_pad) with w_tiles of shape (nk, nj, tk, tn) in bf16 so every
    streamed weight tile is one contiguous HBM block; biases stay f32.
    """
    params = []
    d_in = in_dim
    kp = _pad_feature_dim(d_in)
    for d_out in dims:
        np_ = _pad_feature_dim(d_out)
        key, kw = jax.random.split(key)
        w = (jax.random.normal(kw, (d_in, d_out), dtype=jnp.float32)
             * (1.0 / jnp.sqrt(jnp.float32(d_in))))
        b = jnp.zeros((d_out,), dtype=jnp.float32)
        w_pad = jnp.zeros((kp, np_), jnp.float32).at[:d_in, :d_out].set(w)
        b_pad = jnp.zeros((np_,), jnp.float32).at[:d_out].set(b)

        tk = _pick_tile(kp, TK_MAX, 128)
        tn = _pick_tile(np_, TN_MAX, 128)
        nk, nj = kp // tk, np_ // tn
        w_tiles = (w_pad.astype(jnp.bfloat16)
                   .reshape(nk, tk, nj, tn).transpose(0, 2, 1, 3))
        params.append((w_tiles, b_pad))
        d_in, kp = d_out, np_
    return params


def _prepare_input(cnn_data, lstm_data, k_pad):
    # flatten + concat (matches torch.cat((cnn.reshape, lstm.reshape), 1)), then pad
    B = cnn_data.shape[0]
    cnn_flat = cnn_data.reshape(B, cnn_data.shape[1] * cnn_data.shape[2])
    lstm_flat = lstm_data.reshape(B, lstm_data.shape[1] * lstm_data.shape[2])
    data = jnp.concatenate([cnn_flat, lstm_flat], axis=1)
    Bp = _round_up(max(B, 8), 8)
    data = jnp.pad(data, ((0, Bp - B), (0, k_pad - data.shape[1])))
    return data, B


def deeprl_forward(cnn_data, lstm_data, params, output_dim):
    w0 = params[0][0]
    k_pad = w0.shape[0] * w0.shape[2]
    data, B = _prepare_input(cnn_data, lstm_data, k_pad)
    data = data.astype(jnp.bfloat16)   # one-time cast; all layers stream bf16 activations

    # hot path: 6 x (Linear + ELU) Pallas kernels (bf16 weight streaming, f32 accum);
    # intermediate layers emit bf16, final layer emits f32 for the softmax.
    n_layers = len(params)
    for li, (w, b) in enumerate(params):
        last = li == n_layers - 1
        data = linear_elu(data, w, b, apply_elu=True,
                          out_dtype=jnp.float32 if last else jnp.bfloat16)

    # reshape (-1, output_dim, output_dim), softmax over dim=2 (lane-padded Pallas kernel)
    n_out = output_dim * output_dim
    logits = data[:B, :n_out].reshape(B * output_dim, output_dim)
    probs = softmax_rows(logits)
    return probs.reshape(B, output_dim, output_dim)


def reference_forward(cnn_data, lstm_data, params, output_dim):
    """Pure-JAX reference with identical bf16-weight/activation numerics, for validation."""
    w0 = params[0][0]
    k_pad = w0.shape[0] * w0.shape[2]
    data, B = _prepare_input(cnn_data, lstm_data, k_pad)
    for (w_tiles, b) in params:
        nk, nj, tk, tn = w_tiles.shape
        w2 = w_tiles.transpose(0, 2, 1, 3).reshape(nk * tk, nj * tn)
        y = jnp.dot(data.astype(jnp.bfloat16), w2,
                    preferred_element_type=jnp.float32) + b[None, :]
        data = jnp.where(y > 0.0, y, jnp.exp(jnp.minimum(y, 0.0)) - 1.0)
    n_out = output_dim * output_dim
    logits = data[:B, :n_out].reshape(B, output_dim, output_dim)
    return jax.nn.softmax(logits, axis=-1)


# ----------------------------------- Main ----------------------------------- #

if __name__ == "__main__":
    # Small shapes consistent with the module's structure:
    #   cnn (B, 8, 16) + lstm (B, 8, 16) -> 256 concat features (stand-in for 24200)
    #   MLP 256 -> 512 -> 256x4 -> 1024 (stand-in for 24200->5000->2500x4->10000),
    #   output_dim = 32 (stand-in for 100).
    B = 2
    CNN_SHAPE = (B, 8, 16)
    LSTM_SHAPE = (B, 8, 16)
    OUTPUT_DIM = 32
    MLP_DIMS = (512, 256, 256, 256, 256, OUTPUT_DIM * OUTPUT_DIM)
    IN_DIM = CNN_SHAPE[1] * CNN_SHAPE[2] + LSTM_SHAPE[1] * LSTM_SHAPE[2]

    key = jax.random.PRNGKey(0)
    k_cnn, k_lstm, k_params = jax.random.split(key, 3)
    cnn_data = jax.random.normal(k_cnn, CNN_SHAPE, dtype=jnp.float32)
    lstm_data = jax.random.normal(k_lstm, LSTM_SHAPE, dtype=jnp.float32)
    params = init_params(k_params, IN_DIM, MLP_DIMS)

    fwd = jax.jit(functools.partial(deeprl_forward, output_dim=OUTPUT_DIM))
    out = fwd(cnn_data, lstm_data, params)
    out = jax.block_until_ready(out)

    assert out.shape == (B, OUTPUT_DIM, OUTPUT_DIM)
    # each softmax row sums to 1
    row_sums = jnp.sum(out, axis=-1)
    assert bool(jnp.allclose(row_sums, 1.0, atol=1e-5))
    # matches the pure-JAX reference (same bf16-weight / f32-accumulation numerics)
    ref = jax.block_until_ready(
        reference_forward(cnn_data, lstm_data, params, OUTPUT_DIM))
    assert bool(jnp.allclose(out, ref, atol=1e-3, rtol=1e-3))
    print("KERNEL_OK")
</pallas_src>

<mosaic_0001>
module attributes {stable_mosaic.version = 11 : i64} {
  func.func @_linear_elu_kernel(%arg0: i32, %arg1: i32, %arg2: memref<8x256xbf16, #tpu.memory_space<vmem>>, %arg3: memref<1x1x256x256xbf16, #tpu.memory_space<vmem>>, %arg4: memref<1x256xf32, #tpu.memory_space<vmem>>, %arg5: memref<8x256xbf16, #tpu.memory_space<vmem>>, %arg6: memref<8x256xf32, #tpu.memory_space<vmem>>) attributes {dimension_semantics = [#tpu.dimension_semantics<parallel>, #tpu.dimension_semantics<arbitrary>], iteration_bounds = array<i64: 1, 1>, scalar_prefetch = 0 : i64, scratch_operands = 1 : i64, tpu.core_type = #tpu.core_type<tc>, window_params = [{pipeline_mode = #tpu.pipeline_mode<synchronous>, transform_indices = @transform_0, window_bounds = array<i64: 8, 256>}, {transform_indices = @transform_1, window_bounds = array<i64: 1, 1, 256, 256>}, {transform_indices = @transform_2, window_bounds = array<i64: 1, 256>}, {transform_indices = @transform_3, window_bounds = array<i64: 8, 256>}]} {
    %c0_i32 = arith.constant 0 : i32
    %0 = arith.cmpi eq, %arg1, %c0_i32 : i32
    %1 = arith.extui %0 : i1 to i32
    %c0_i32_0 = arith.constant 0 : i32
    %2 = arith.cmpi ne, %1, %c0_i32_0 : i32
    scf.if %2 {
      %cst_11 = arith.constant 0.000000e+00 : f32
      %16 = vector.broadcast %cst_11 : f32 to vector<8x256xf32>
      %c0_12 = arith.constant 0 : index
      %c0_13 = arith.constant 0 : index
      %17 = vector.load %arg6[%c0_12, %c0_13] : memref<8x256xf32, #tpu.memory_space<vmem>>, vector<8x256xf32>
      tpu.vector_store %arg6[%c0_12, %c0_13], %16 {strides = array<i32>} : memref<8x256xf32, #tpu.memory_space<vmem>>, vector<8x256xf32>,
    } else {
    }
    %c256_i32 = arith.constant 256 : i32
    %3 = arith.muli %arg1, %c256_i32 : i32
    %4 = tpu.assume_multiple %3, 128 : i32
    %c0 = arith.constant 0 : index
    %5 = arith.index_cast %4 : i32 to index
    %6 = vector.load %arg2[%c0, %5] : memref<8x256xbf16, #tpu.memory_space<vmem>>, vector<8x256xbf16>
    %c0_1 = arith.constant 0 : index
    %c0_2 = arith.constant 0 : index
    %7 = vector.load %arg6[%c0_1, %c0_2] : memref<8x256xf32, #tpu.memory_space<vmem>>, vector<8x256xf32>
    %c0_3 = arith.constant 0 : index
    %c0_4 = arith.constant 0 : index
    %c0_5 = arith.constant 0 : index
    %c0_6 = arith.constant 0 : index
    %8 = vector.load %arg3[%c0_3, %c0_4, %c0_5, %c0_6] : memref<1x1x256x256xbf16, #tpu.memory_space<vmem>>, vector<1x1x256x256xbf16>
    %9 = vector.shape_cast %8 : vector<1x1x256x256xbf16> to vector<256x256xbf16>
    %cst = arith.constant dense<0.000000e+00> : vector<8x256xf32>
    %10 = tpu.matmul %6, %9, %cst {dimension_numbers = #tpu.dot_dimension_numbers<[1], [0], [0], [1], [0, 0, 1, 1], [], []>} : vector<8x256xbf16>, vector<256x256xbf16>, vector<8x256xf32> -> vector<8x256xf32>
    %11 = arith.addf %7, %10 : vector<8x256xf32>
    %c0_7 = arith.constant 0 : index
    %c0_8 = arith.constant 0 : index
    %12 = vector.load %arg6[%c0_7, %c0_8] : memref<8x256xf32, #tpu.memory_space<vmem>>, vector<8x256xf32>
    tpu.vector_store %arg6[%c0_7, %c0_8], %11 {strides = array<i32>} : memref<8x256xf32, #tpu.memory_space<vmem>>, vector<8x256xf32>,
    %c0_i32_9 = arith.constant 0 : i32
    %13 = arith.cmpi eq, %arg1, %c0_i32_9 : i32
    %14 = arith.extui %13 : i1 to i32
    %c0_i32_10 = arith.constant 0 : i32
    %15 = arith.cmpi ne, %14, %c0_i32_10 : i32
    scf.if %15 {
      %c0_11 = arith.constant 0 : index
      %c0_12 = arith.constant 0 : index
      %16 = vector.load %arg6[%c0_11, %c0_12] : memref<8x256xf32, #tpu.memory_space<vmem>>, vector<8x256xf32>
      %c0_13 = arith.constant 0 : index
      %c0_14 = arith.constant 0 : index
      %17 = vector.load %arg4[%c0_13, %c0_14] : memref<1x256xf32, #tpu.memory_space<vmem>>, vector<1x256xf32>
      %18 = vector.broadcast %17 : vector<1x256xf32> to vector<8x256xf32>
      %19 = arith.addf %16, %18 : vector<8x256xf32>
      %cst_15 = arith.constant 0.000000e+00 : f32
      %20 = vector.broadcast %cst_15 : f32 to vector<8x256xf32>
      %21 = arith.cmpf ogt, %19, %20 : vector<8x256xf32>
      %cst_16 = arith.constant 0.000000e+00 : f32
      %22 = vector.broadcast %cst_16 : f32 to vector<8x256xf32>
      %23 = arith.minimumf %19, %22 : vector<8x256xf32>
      %24 = math.exp %23 : vector<8x256xf32>
      %cst_17 = arith.constant 1.000000e+00 : f32
      %25 = vector.broadcast %cst_17 : f32 to vector<8x256xf32>
      %26 = arith.subf %24, %25 : vector<8x256xf32>
      %27 = arith.select %21, %19, %26 : vector<8x256xi1>, vector<8x256xf32>
      %28 = arith.truncf %27 : vector<8x256xf32> to vector<8x256xbf16>
      %c0_18 = arith.constant 0 : index
      %c0_19 = arith.constant 0 : index
      %29 = vector.load %arg5[%c0_18, %c0_19] : memref<8x256xbf16, #tpu.memory_space<vmem>>, vector<8x256xbf16>
      tpu.vector_store %arg5[%c0_18, %c0_19], %28 {strides = array<i32>} : memref<8x256xbf16, #tpu.memory_space<vmem>>, vector<8x256xbf16>,
    } else {
    }
    return
  }
  func.func @transform_0(%arg0: i32, %arg1: i32) -> (i32, i32) {
    %c0_i32 = arith.constant 0 : i32
    %c0_i32_0 = arith.constant 0 : i32
    %c0_i32_1 = arith.constant 0 : i32
    return %c0_i32, %c0_i32_0 : i32, i32
  }
  func.func @transform_1(%arg0: i32, %arg1: i32) -> (i32, i32, i32, i32) {
    %c0_i32 = arith.constant 0 : i32
    %c0_i32_0 = arith.constant 0 : i32
    %c0_i32_1 = arith.constant 0 : i32
    return %arg1, %arg0, %c0_i32, %c0_i32_0 : i32, i32, i32, i32
  }
  func.func @transform_2(%arg0: i32, %arg1: i32) -> (i32, i32) {
    %c0_i32 = arith.constant 0 : i32
    %c0_i32_0 = arith.constant 0 : i32
    return %c0_i32, %arg0 : i32, i32
  }
  func.func @transform_3(%arg0: i32, %arg1: i32) -> (i32, i32) {
    %c0_i32 = arith.constant 0 : i32
    %c0_i32_0 = arith.constant 0 : i32
    return %c0_i32, %arg0 : i32, i32
  }
}

module attributes {stable_mosaic.version = 11 : i64} {
  func.func @_linear_elu_kernel(%arg0: i32, %arg1: i32, %arg2: memref<8x256xbf16, #tpu.memory_space<vmem>>, %arg3: memref<1x1x256x256xbf16, #tpu.memory_space<vmem>>, %arg4: memref<1x256xf32, #tpu.memory_space<vmem>>, %arg5: memref<8x256xbf16, #tpu.memory_space<vmem>>, %arg6: memref<8x256xf32, #tpu.memory_space<vmem>>) attributes {dimension_semantics = [#tpu.dimension_semantics<parallel>, #tpu.dimension_semantics<arbitrary>], iteration_bounds = array<i64: 1, 1>, scalar_prefetch = 0 : i64, scratch_operands = 1 : i64, tpu.core_type = #tpu.core_type<tc>, window_params = [{pipeline_mode = #tpu.pipeline_mode<synchronous>, transform_indices = @transform_0, window_bounds = array<i64: 8, 256>}, {transform_indices = @transform_1, window_bounds = array<i64: 1, 1, 256, 256>}, {transform_indices = @transform_2, window_bounds = array<i64: 1, 256>}, {transform_indices = @transform_3, window_bounds = array<i64: 8, 256>}]} {
    %c0_i32 = arith.constant 0 : i32
    %0 = arith.cmpi eq, %arg1, %c0_i32 : i32
    %1 = arith.extui %0 : i1 to i32
    %c0_i32_0 = arith.constant 0 : i32
    %2 = arith.cmpi ne, %1, %c0_i32_0 : i32
    scf.if %2 {
      %cst_11 = arith.constant 0.000000e+00 : f32
      %16 = vector.broadcast %cst_11 : f32 to vector<8x256xf32>
      %c0_12 = arith.constant 0 : index
      %c0_13 = arith.constant 0 : index
      %17 = vector.load %arg6[%c0_12, %c0_13] : memref<8x256xf32, #tpu.memory_space<vmem>>, vector<8x256xf32>
      tpu.vector_store %arg6[%c0_12, %c0_13], %16 {strides = array<i32>} : memref<8x256xf32, #tpu.memory_space<vmem>>, vector<8x256xf32>,
    } else {
    }
    %c256_i32 = arith.constant 256 : i32
    %3 = arith.muli %arg1, %c256_i32 : i32
    %4 = tpu.assume_multiple %3, 128 : i32
    %c0 = arith.constant 0 : index
    %5 = arith.index_cast %4 : i32 to index
    %6 = vector.load %arg2[%c0, %5] : memref<8x256xbf16, #tpu.memory_space<vmem>>, vector<8x256xbf16>
    %c0_1 = arith.constant 0 : index
    %c0_2 = arith.constant 0 : index
    %7 = vector.load %arg6[%c0_1, %c0_2] : memref<8x256xf32, #tpu.memory_space<vmem>>, vector<8x256xf32>
    %c0_3 = arith.constant 0 : index
    %c0_4 = arith.constant 0 : index
    %c0_5 = arith.constant 0 : index
    %c0_6 = arith.constant 0 : index
    %8 = vector.load %arg3[%c0_3, %c0_4, %c0_5, %c0_6] : memref<1x1x256x256xbf16, #tpu.memory_space<vmem>>, vector<1x1x256x256xbf16>
    %9 = vector.shape_cast %8 : vector<1x1x256x256xbf16> to vector<256x256xbf16>
    %cst = arith.constant dense<0.000000e+00> : vector<8x256xf32>
    %10 = tpu.matmul %6, %9, %cst {dimension_numbers = #tpu.dot_dimension_numbers<[1], [0], [0], [1], [0, 0, 1, 1], [], []>} : vector<8x256xbf16>, vector<256x256xbf16>, vector<8x256xf32> -> vector<8x256xf32>
    %11 = arith.addf %7, %10 : vector<8x256xf32>
    %c0_7 = arith.constant 0 : index
    %c0_8 = arith.constant 0 : index
    %12 = vector.load %arg6[%c0_7, %c0_8] : memref<8x256xf32, #tpu.memory_space<vmem>>, vector<8x256xf32>
    tpu.vector_store %arg6[%c0_7, %c0_8], %11 {strides = array<i32>} : memref<8x256xf32, #tpu.memory_space<vmem>>, vector<8x256xf32>,
    %c0_i32_9 = arith.constant 0 : i32
    %13 = arith.cmpi eq, %arg1, %c0_i32_9 : i32
    %14 = arith.extui %13 : i1 to i32
    %c0_i32_10 = arith.constant 0 : i32
    %15 = arith.cmpi ne, %14, %c0_i32_10 : i32
    scf.if %15 {
      %c0_11 = arith.constant 0 : index
      %c0_12 = arith.constant 0 : index
      %16 = vector.load %arg6[%c0_11, %c0_12] : memref<8x256xf32, #tpu.memory_space<vmem>>, vector<8x256xf32>
      %c0_13 = arith.constant 0 : index
      %c0_14 = arith.constant 0 : index
      %17 = vector.load %arg4[%c0_13, %c0_14] : memref<1x256xf32, #tpu.memory_space<vmem>>, vector<1x256xf32>
      %18 = vector.broadcast %17 : vector<1x256xf32> to vector<8x256xf32>
      %19 = arith.addf %16, %18 : vector<8x256xf32>
      %cst_15 = arith.constant 0.000000e+00 : f32
      %20 = vector.broadcast %cst_15 : f32 to vector<8x256xf32>
      %21 = arith.cmpf ogt, %19, %20 : vector<8x256xf32>
      %cst_16 = arith.constant 0.000000e+00 : f32
      %22 = vector.broadcast %cst_16 : f32 to vector<8x256xf32>
      %23 = arith.minimumf %19, %22 : vector<8x256xf32>
      %24 = math.exp %23 : vector<8x256xf32>
      %cst_17 = arith.constant 1.000000e+00 : f32
      %25 = vector.broadcast %cst_17 : f32 to vector<8x256xf32>
      %26 = arith.subf %24, %25 : vector<8x256xf32>
      %27 = arith.select %21, %19, %26 : vector<8x256xi1>, vector<8x256xf32>
      %28 = arith.truncf %27 : vector<8x256xf32> to vector<8x256xbf16>
      %c0_18 = arith.constant 0 : index
      %c0_19 = arith.constant 0 : index
      %29 = vector.load %arg5[%c0_18, %c0_19] : memref<8x256xbf16, #tpu.memory_space<vmem>>, vector<8x256xbf16>
      tpu.vector_store %arg5[%c0_18, %c0_19], %28 {strides = array<i32>} : memref<8x256xbf16, #tpu.memory_space<vmem>>, vector<8x256xbf16>,
    } else {
    }
    return
  }
  func.func @transform_0(%arg0: i32, %arg1: i32) -> (i32, i32) {
    %c0_i32 = arith.constant 0 : i32
    %c0_i32_0 = arith.constant 0 : i32
    %c0_i32_1 = arith.constant 0 : i32
    return %c0_i32, %c0_i32_0 : i32, i32
  }
  func.func @transform_1(%arg0: i32, %arg1: i32) -> (i32, i32, i32, i32) {
    %c0_i32 = arith.constant 0 : i32
    %c0_i32_0 = arith.constant 0 : i32
    %c0_i32_1 = arith.constant 0 : i32
    return %arg1, %arg0, %c0_i32, %c0_i32_0 : i32, i32, i32, i32
  }
  func.func @transform_2(%arg0: i32, %arg1: i32) -> (i32, i32) {
    %c0_i32 = arith.constant 0 : i32
    %c0_i32_0 = arith.constant 0 : i32
    return %c0_i32, %arg0 : i32, i32
  }
  func.func @transform_3(%arg0: i32, %arg1: i32) -> (i32, i32) {
    %c0_i32 = arith.constant 0 : i32
    %c0_i32_0 = arith.constant 0 : i32
    return %c0_i32, %arg0 : i32, i32
  }
}

module attributes {stable_mosaic.version = 11 : i64} {
  func.func @_linear_elu_kernel(%arg0: i32, %arg1: i32, %arg2: memref<8x512xbf16, #tpu.memory_space<vmem>>, %arg3: memref<1x1x512x256xbf16, #tpu.memory_space<vmem>>, %arg4: memref<1x256xf32, #tpu.memory_space<vmem>>, %arg5: memref<8x256xbf16, #tpu.memory_space<vmem>>, %arg6: memref<8x256xf32, #tpu.memory_space<vmem>>) attributes {dimension_semantics = [#tpu.dimension_semantics<parallel>, #tpu.dimension_semantics<arbitrary>], iteration_bounds = array<i64: 1, 1>, scalar_prefetch = 0 : i64, scratch_operands = 1 : i64, tpu.core_type = #tpu.core_type<tc>, window_params = [{pipeline_mode = #tpu.pipeline_mode<synchronous>, transform_indices = @transform_0, window_bounds = array<i64: 8, 512>}, {transform_indices = @transform_1, window_bounds = array<i64: 1, 1, 512, 256>}, {transform_indices = @transform_2, window_bounds = array<i64: 1, 256>}, {transform_indices = @transform_3, window_bounds = array<i64: 8, 256>}]} {
    %c0_i32 = arith.constant 0 : i32
    %0 = arith.cmpi eq, %arg1, %c0_i32 : i32
    %1 = arith.extui %0 : i1 to i32
    %c0_i32_0 = arith.constant 0 : i32
    %2 = arith.cmpi ne, %1, %c0_i32_0 : i32
    scf.if %2 {
      %cst_11 = arith.constant 0.000000e+00 : f32
      %16 = vector.broadcast %cst_11 : f32 to vector<8x256xf32>
      %c0_12 = arith.constant 0 : index
      %c0_13 = arith.constant 0 : index
      %17 = vector.load %arg6[%c0_12, %c0_13] : memref<8x256xf32, #tpu.memory_space<vmem>>, vector<8x256xf32>
      tpu.vector_store %arg6[%c0_12, %c0_13], %16 {strides = array<i32>} : memref<8x256xf32, #tpu.memory_space<vmem>>, vector<8x256xf32>,
    } else {
    }
    %c512_i32 = arith.constant 512 : i32
    %3 = arith.muli %arg1, %c512_i32 : i32
    %4 = tpu.assume_multiple %3, 128 : i32
    %c0 = arith.constant 0 : index
    %5 = arith.index_cast %4 : i32 to index
    %6 = vector.load %arg2[%c0, %5] : memref<8x512xbf16, #tpu.memory_space<vmem>>, vector<8x512xbf16>
    %c0_1 = arith.constant 0 : index
    %c0_2 = arith.constant 0 : index
    %7 = vector.load %arg6[%c0_1, %c0_2] : memref<8x256xf32, #tpu.memory_space<vmem>>, vector<8x256xf32>
    %c0_3 = arith.constant 0 : index
    %c0_4 = arith.constant 0 : index
    %c0_5 = arith.constant 0 : index
    %c0_6 = arith.constant 0 : index
    %8 = vector.load %arg3[%c0_3, %c0_4, %c0_5, %c0_6] : memref<1x1x512x256xbf16, #tpu.memory_space<vmem>>, vector<1x1x512x256xbf16>
    %9 = vector.shape_cast %8 : vector<1x1x512x256xbf16> to vector<512x256xbf16>
    %cst = arith.constant dense<0.000000e+00> : vector<8x256xf32>
    %10 = tpu.matmul %6, %9, %cst {dimension_numbers = #tpu.dot_dimension_numbers<[1], [0], [0], [1], [0, 0, 1, 1], [], []>} : vector<8x512xbf16>, vector<512x256xbf16>, vector<8x256xf32> -> vector<8x256xf32>
    %11 = arith.addf %7, %10 : vector<8x256xf32>
    %c0_7 = arith.constant 0 : index
    %c0_8 = arith.constant 0 : index
    %12 = vector.load %arg6[%c0_7, %c0_8] : memref<8x256xf32, #tpu.memory_space<vmem>>, vector<8x256xf32>
    tpu.vector_store %arg6[%c0_7, %c0_8], %11 {strides = array<i32>} : memref<8x256xf32, #tpu.memory_space<vmem>>, vector<8x256xf32>,
    %c0_i32_9 = arith.constant 0 : i32
    %13 = arith.cmpi eq, %arg1, %c0_i32_9 : i32
    %14 = arith.extui %13 : i1 to i32
    %c0_i32_10 = arith.constant 0 : i32
    %15 = arith.cmpi ne, %14, %c0_i32_10 : i32
    scf.if %15 {
      %c0_11 = arith.constant 0 : index
      %c0_12 = arith.constant 0 : index
      %16 = vector.load %arg6[%c0_11, %c0_12] : memref<8x256xf32, #tpu.memory_space<vmem>>, vector<8x256xf32>
      %c0_13 = arith.constant 0 : index
      %c0_14 = arith.constant 0 : index
      %17 = vector.load %arg4[%c0_13, %c0_14] : memref<1x256xf32, #tpu.memory_space<vmem>>, vector<1x256xf32>
      %18 = vector.broadcast %17 : vector<1x256xf32> to vector<8x256xf32>
      %19 = arith.addf %16, %18 : vector<8x256xf32>
      %cst_15 = arith.constant 0.000000e+00 : f32
      %20 = vector.broadcast %cst_15 : f32 to vector<8x256xf32>
      %21 = arith.cmpf ogt, %19, %20 : vector<8x256xf32>
      %cst_16 = arith.constant 0.000000e+00 : f32
      %22 = vector.broadcast %cst_16 : f32 to vector<8x256xf32>
      %23 = arith.minimumf %19, %22 : vector<8x256xf32>
      %24 = math.exp %23 : vector<8x256xf32>
      %cst_17 = arith.constant 1.000000e+00 : f32
      %25 = vector.broadcast %cst_17 : f32 to vector<8x256xf32>
      %26 = arith.subf %24, %25 : vector<8x256xf32>
      %27 = arith.select %21, %19, %26 : vector<8x256xi1>, vector<8x256xf32>
      %28 = arith.truncf %27 : vector<8x256xf32> to vector<8x256xbf16>
      %c0_18 = arith.constant 0 : index
      %c0_19 = arith.constant 0 : index
      %29 = vector.load %arg5[%c0_18, %c0_19] : memref<8x256xbf16, #tpu.memory_space<vmem>>, vector<8x256xbf16>
      tpu.vector_store %arg5[%c0_18, %c0_19], %28 {strides = array<i32>} : memref<8x256xbf16, #tpu.memory_space<vmem>>, vector<8x256xbf16>,
    } else {
    }
    return
  }
  func.func @transform_0(%arg0: i32, %arg1: i32) -> (i32, i32) {
    %c0_i32 = arith.constant 0 : i32
    %c0_i32_0 = arith.constant 0 : i32
    %c0_i32_1 = arith.constant 0 : i32
    return %c0_i32, %c0_i32_0 : i32, i32
  }
  func.func @transform_1(%arg0: i32, %arg1: i32) -> (i32, i32, i32, i32) {
    %c0_i32 = arith.constant 0 : i32
    %c0_i32_0 = arith.constant 0 : i32
    %c0_i32_1 = arith.constant 0 : i32
    return %arg1, %arg0, %c0_i32, %c0_i32_0 : i32, i32, i32, i32
  }
  func.func @transform_2(%arg0: i32, %arg1: i32) -> (i32, i32) {
    %c0_i32 = arith.constant 0 : i32
    %c0_i32_0 = arith.constant 0 : i32
    return %c0_i32, %arg0 : i32, i32
  }
  func.func @transform_3(%arg0: i32, %arg1: i32) -> (i32, i32) {
    %c0_i32 = arith.constant 0 : i32
    %c0_i32_0 = arith.constant 0 : i32
    return %c0_i32, %arg0 : i32, i32
  }
}

module attributes {stable_mosaic.version = 11 : i64} {
  func.func @_linear_elu_kernel(%arg0: i32, %arg1: i32, %arg2: memref<8x256xbf16, #tpu.memory_space<vmem>>, %arg3: memref<1x1x256x512xbf16, #tpu.memory_space<vmem>>, %arg4: memref<1x512xf32, #tpu.memory_space<vmem>>, %arg5: memref<8x512xbf16, #tpu.memory_space<vmem>>, %arg6: memref<8x512xf32, #tpu.memory_space<vmem>>) attributes {dimension_semantics = [#tpu.dimension_semantics<parallel>, #tpu.dimension_semantics<arbitrary>], iteration_bounds = array<i64: 1, 1>, scalar_prefetch = 0 : i64, scratch_operands = 1 : i64, tpu.core_type = #tpu.core_type<tc>, window_params = [{pipeline_mode = #tpu.pipeline_mode<synchronous>, transform_indices = @transform_0, window_bounds = array<i64: 8, 256>}, {transform_indices = @transform_1, window_bounds = array<i64: 1, 1, 256, 512>}, {transform_indices = @transform_2, window_bounds = array<i64: 1, 512>}, {transform_indices = @transform_3, window_bounds = array<i64: 8, 512>}]} {
    %c0_i32 = arith.constant 0 : i32
    %0 = arith.cmpi eq, %arg1, %c0_i32 : i32
    %1 = arith.extui %0 : i1 to i32
    %c0_i32_0 = arith.constant 0 : i32
    %2 = arith.cmpi ne, %1, %c0_i32_0 : i32
    scf.if %2 {
      %cst_11 = arith.constant 0.000000e+00 : f32
      %16 = vector.broadcast %cst_11 : f32 to vector<8x512xf32>
      %c0_12 = arith.constant 0 : index
      %c0_13 = arith.constant 0 : index
      %17 = vector.load %arg6[%c0_12, %c0_13] : memref<8x512xf32, #tpu.memory_space<vmem>>, vector<8x512xf32>
      tpu.vector_store %arg6[%c0_12, %c0_13], %16 {strides = array<i32>} : memref<8x512xf32, #tpu.memory_space<vmem>>, vector<8x512xf32>,
    } else {
    }
    %c256_i32 = arith.constant 256 : i32
    %3 = arith.muli %arg1, %c256_i32 : i32
    %4 = tpu.assume_multiple %3, 128 : i32
    %c0 = arith.constant 0 : index
    %5 = arith.index_cast %4 : i32 to index
    %6 = vector.load %arg2[%c0, %5] : memref<8x256xbf16, #tpu.memory_space<vmem>>, vector<8x256xbf16>
    %c0_1 = arith.constant 0 : index
    %c0_2 = arith.constant 0 : index
    %7 = vector.load %arg6[%c0_1, %c0_2] : memref<8x512xf32, #tpu.memory_space<vmem>>, vector<8x512xf32>
    %c0_3 = arith.constant 0 : index
    %c0_4 = arith.constant 0 : index
    %c0_5 = arith.constant 0 : index
    %c0_6 = arith.constant 0 : index
    %8 = vector.load %arg3[%c0_3, %c0_4, %c0_5, %c0_6] : memref<1x1x256x512xbf16, #tpu.memory_space<vmem>>, vector<1x1x256x512xbf16>
    %9 = vector.shape_cast %8 : vector<1x1x256x512xbf16> to vector<256x512xbf16>
    %cst = arith.constant dense<0.000000e+00> : vector<8x512xf32>
    %10 = tpu.matmul %6, %9, %cst {dimension_numbers = #tpu.dot_dimension_numbers<[1], [0], [0], [1], [0, 0, 1, 1], [], []>} : vector<8x256xbf16>, vector<256x512xbf16>, vector<8x512xf32> -> vector<8x512xf32>
    %11 = arith.addf %7, %10 : vector<8x512xf32>
    %c0_7 = arith.constant 0 : index
    %c0_8 = arith.constant 0 : index
    %12 = vector.load %arg6[%c0_7, %c0_8] : memref<8x512xf32, #tpu.memory_space<vmem>>, vector<8x512xf32>
    tpu.vector_store %arg6[%c0_7, %c0_8], %11 {strides = array<i32>} : memref<8x512xf32, #tpu.memory_space<vmem>>, vector<8x512xf32>,
    %c0_i32_9 = arith.constant 0 : i32
    %13 = arith.cmpi eq, %arg1, %c0_i32_9 : i32
    %14 = arith.extui %13 : i1 to i32
    %c0_i32_10 = arith.constant 0 : i32
    %15 = arith.cmpi ne, %14, %c0_i32_10 : i32
    scf.if %15 {
      %c0_11 = arith.constant 0 : index
      %c0_12 = arith.constant 0 : index
      %16 = vector.load %arg6[%c0_11, %c0_12] : memref<8x512xf32, #tpu.memory_space<vmem>>, vector<8x512xf32>
      %c0_13 = arith.constant 0 : index
      %c0_14 = arith.constant 0 : index
      %17 = vector.load %arg4[%c0_13, %c0_14] : memref<1x512xf32, #tpu.memory_space<vmem>>, vector<1x512xf32>
      %18 = vector.broadcast %17 : vector<1x512xf32> to vector<8x512xf32>
      %19 = arith.addf %16, %18 : vector<8x512xf32>
      %cst_15 = arith.constant 0.000000e+00 : f32
      %20 = vector.broadcast %cst_15 : f32 to vector<8x512xf32>
      %21 = arith.cmpf ogt, %19, %20 : vector<8x512xf32>
      %cst_16 = arith.constant 0.000000e+00 : f32
      %22 = vector.broadcast %cst_16 : f32 to vector<8x512xf32>
      %23 = arith.minimumf %19, %22 : vector<8x512xf32>
      %24 = math.exp %23 : vector<8x512xf32>
      %cst_17 = arith.constant 1.000000e+00 : f32
      %25 = vector.broadcast %cst_17 : f32 to vector<8x512xf32>
      %26 = arith.subf %24, %25 : vector<8x512xf32>
      %27 = arith.select %21, %19, %26 : vector<8x512xi1>, vector<8x512xf32>
      %28 = arith.truncf %27 : vector<8x512xf32> to vector<8x512xbf16>
      %c0_18 = arith.constant 0 : index
      %c0_19 = arith.constant 0 : index
      %29 = vector.load %arg5[%c0_18, %c0_19] : memref<8x512xbf16, #tpu.memory_space<vmem>>, vector<8x512xbf16>
      tpu.vector_store %arg5[%c0_18, %c0_19], %28 {strides = array<i32>} : memref<8x512xbf16, #tpu.memory_space<vmem>>, vector<8x512xbf16>,
    } else {
    }
    return
  }
  func.func @transform_0(%arg0: i32, %arg1: i32) -> (i32, i32) {
    %c0_i32 = arith.constant 0 : i32
    %c0_i32_0 = arith.constant 0 : i32
    %c0_i32_1 = arith.constant 0 : i32
    return %c0_i32, %c0_i32_0 : i32, i32
  }
  func.func @transform_1(%arg0: i32, %arg1: i32) -> (i32, i32, i32, i32) {
    %c0_i32 = arith.constant 0 : i32
    %c0_i32_0 = arith.constant 0 : i32
    %c0_i32_1 = arith.constant 0 : i32
    return %arg1, %arg0, %c0_i32, %c0_i32_0 : i32, i32, i32, i32
  }
  func.func @transform_2(%arg0: i32, %arg1: i32) -> (i32, i32) {
    %c0_i32 = arith.constant 0 : i32
    %c0_i32_0 = arith.constant 0 : i32
    return %c0_i32, %arg0 : i32, i32
  }
  func.func @transform_3(%arg0: i32, %arg1: i32) -> (i32, i32) {
    %c0_i32 = arith.constant 0 : i32
    %c0_i32_0 = arith.constant 0 : i32
    return %c0_i32, %arg0 : i32, i32
  }
}

module attributes {stable_mosaic.version = 11 : i64} {
  func.func @_softmax_rows_kernel(%arg0: i32, %arg1: memref<64x128xf32, #tpu.memory_space<vmem>>, %arg2: memref<64x128xf32, #tpu.memory_space<vmem>>) attributes {dimension_semantics = [#tpu.dimension_semantics<parallel>], iteration_bounds = array<i64: 1>, scalar_prefetch = 0 : i64, scratch_operands = 0 : i64, tpu.core_type = #tpu.core_type<tc>, window_params = [{transform_indices = @transform_0, window_bounds = array<i64: 64, 128>}, {transform_indices = @transform_1, window_bounds = array<i64: 64, 128>}]} {
    %c0 = arith.constant 0 : index
    %c0_0 = arith.constant 0 : index
    %0 = vector.load %arg1[%c0, %c0_0] : memref<64x128xf32, #tpu.memory_space<vmem>>, vector<64x128xf32>
    %cst = arith.constant dense<0xFF800000> : vector<64xf32>
    %1 = vector.multi_reduction <maximumf>, %0, %cst [1] : vector<64x128xf32> to vector<64xf32>
    %2 = vector.shape_cast %1 : vector<64xf32> to vector<64x1xf32>
    %3 = vector.broadcast %2 : vector<64x1xf32> to vector<64x128xf32>
    %4 = arith.subf %0, %3 : vector<64x128xf32>
    %5 = math.exp %4 : vector<64x128xf32>
    %cst_1 = arith.constant dense<0.000000e+00> : vector<64xf32>
    %6 = vector.multi_reduction <add>, %5, %cst_1 [1] : vector<64x128xf32> to vector<64xf32>
    %7 = vector.shape_cast %6 : vector<64xf32> to vector<64x1xf32>
    %8 = vector.broadcast %7 : vector<64x1xf32> to vector<64x128xf32>
    %9 = arith.divf %5, %8 : vector<64x128xf32>
    %c0_2 = arith.constant 0 : index
    %c0_3 = arith.constant 0 : index
    %10 = vector.load %arg2[%c0_2, %c0_3] : memref<64x128xf32, #tpu.memory_space<vmem>>, vector<64x128xf32>
    tpu.vector_store %arg2[%c0_2, %c0_3], %9 {strides = array<i32>} : memref<64x128xf32, #tpu.memory_space<vmem>>, vector<64x128xf32>,
    return
  }
  func.func @transform_0(%arg0: i32) -> (i32, i32) {
    %c0_i32 = arith.constant 0 : i32
    %c0_i32_0 = arith.constant 0 : i32
    return %arg0, %c0_i32 : i32, i32
  }
  func.func @transform_1(%arg0: i32) -> (i32, i32) {
    %c0_i32 = arith.constant 0 : i32
    %c0_i32_0 = arith.constant 0 : i32
    return %arg0, %c0_i32 : i32, i32
  }
}

module attributes {stable_mosaic.version = 11 : i64} {
  func.func @_linear_elu_kernel(%arg0: i32, %arg1: i32, %arg2: memref<8x256xbf16, #tpu.memory_space<vmem>>, %arg3: memref<1x1x256x1024xbf16, #tpu.memory_space<vmem>>, %arg4: memref<1x1024xf32, #tpu.memory_space<vmem>>, %arg5: memref<8x1024xf32, #tpu.memory_space<vmem>>, %arg6: memref<8x1024xf32, #tpu.memory_space<vmem>>) attributes {dimension_semantics = [#tpu.dimension_semantics<parallel>, #tpu.dimension_semantics<arbitrary>], iteration_bounds = array<i64: 1, 1>, scalar_prefetch = 0 : i64, scratch_operands = 1 : i64, tpu.core_type = #tpu.core_type<tc>, window_params = [{pipeline_mode = #tpu.pipeline_mode<synchronous>, transform_indices = @transform_0, window_bounds = array<i64: 8, 256>}, {transform_indices = @transform_1, window_bounds = array<i64: 1, 1, 256, 1024>}, {transform_indices = @transform_2, window_bounds = array<i64: 1, 1024>}, {transform_indices = @transform_3, window_bounds = array<i64: 8, 1024>}]} {
    %c0_i32 = arith.constant 0 : i32
    %0 = arith.cmpi eq, %arg1, %c0_i32 : i32
    %1 = arith.extui %0 : i1 to i32
    %c0_i32_0 = arith.constant 0 : i32
    %2 = arith.cmpi ne, %1, %c0_i32_0 : i32
    scf.if %2 {
      %cst_11 = arith.constant 0.000000e+00 : f32
      %16 = vector.broadcast %cst_11 : f32 to vector<8x1024xf32>
      %c0_12 = arith.constant 0 : index
      %c0_13 = arith.constant 0 : index
      %17 = vector.load %arg6[%c0_12, %c0_13] : memref<8x1024xf32, #tpu.memory_space<vmem>>, vector<8x1024xf32>
      tpu.vector_store %arg6[%c0_12, %c0_13], %16 {strides = array<i32>} : memref<8x1024xf32, #tpu.memory_space<vmem>>, vector<8x1024xf32>,
    } else {
    }
    %c256_i32 = arith.constant 256 : i32
    %3 = arith.muli %arg1, %c256_i32 : i32
    %4 = tpu.assume_multiple %3, 128 : i32
    %c0 = arith.constant 0 : index
    %5 = arith.index_cast %4 : i32 to index
    %6 = vector.load %arg2[%c0, %5] : memref<8x256xbf16, #tpu.memory_space<vmem>>, vector<8x256xbf16>
    %c0_1 = arith.constant 0 : index
    %c0_2 = arith.constant 0 : index
    %7 = vector.load %arg6[%c0_1, %c0_2] : memref<8x1024xf32, #tpu.memory_space<vmem>>, vector<8x1024xf32>
    %c0_3 = arith.constant 0 : index
    %c0_4 = arith.constant 0 : index
    %c0_5 = arith.constant 0 : index
    %c0_6 = arith.constant 0 : index
    %8 = vector.load %arg3[%c0_3, %c0_4, %c0_5, %c0_6] : memref<1x1x256x1024xbf16, #tpu.memory_space<vmem>>, vector<1x1x256x1024xbf16>
    %9 = vector.shape_cast %8 : vector<1x1x256x1024xbf16> to vector<256x1024xbf16>
    %cst = arith.constant dense<0.000000e+00> : vector<8x1024xf32>
    %10 = tpu.matmul %6, %9, %cst {dimension_numbers = #tpu.dot_dimension_numbers<[1], [0], [0], [1], [0, 0, 1, 1], [], []>} : vector<8x256xbf16>, vector<256x1024xbf16>, vector<8x1024xf32> -> vector<8x1024xf32>
    %11 = arith.addf %7, %10 : vector<8x1024xf32>
    %c0_7 = arith.constant 0 : index
    %c0_8 = arith.constant 0 : index
    %12 = vector.load %arg6[%c0_7, %c0_8] : memref<8x1024xf32, #tpu.memory_space<vmem>>, vector<8x1024xf32>
    tpu.vector_store %arg6[%c0_7, %c0_8], %11 {strides = array<i32>} : memref<8x1024xf32, #tpu.memory_space<vmem>>, vector<8x1024xf32>,
    %c0_i32_9 = arith.constant 0 : i32
    %13 = arith.cmpi eq, %arg1, %c0_i32_9 : i32
    %14 = arith.extui %13 : i1 to i32
    %c0_i32_10 = arith.constant 0 : i32
    %15 = arith.cmpi ne, %14, %c0_i32_10 : i32
    scf.if %15 {
      %c0_11 = arith.constant 0 : index
      %c0_12 = arith.constant 0 : index
      %16 = vector.load %arg6[%c0_11, %c0_12] : memref<8x1024xf32, #tpu.memory_space<vmem>>, vector<8x1024xf32>
      %c0_13 = arith.constant 0 : index
      %c0_14 = arith.constant 0 : index
      %17 = vector.load %arg4[%c0_13, %c0_14] : memref<1x1024xf32, #tpu.memory_space<vmem>>, vector<1x1024xf32>
      %18 = vector.broadcast %17 : vector<1x1024xf32> to vector<8x1024xf32>
      %19 = arith.addf %16, %18 : vector<8x1024xf32>
      %cst_15 = arith.constant 0.000000e+00 : f32
      %20 = vector.broadcast %cst_15 : f32 to vector<8x1024xf32>
      %21 = arith.cmpf ogt, %19, %20 : vector<8x1024xf32>
      %cst_16 = arith.constant 0.000000e+00 : f32
      %22 = vector.broadcast %cst_16 : f32 to vector<8x1024xf32>
      %23 = arith.minimumf %19, %22 : vector<8x1024xf32>
      %24 = math.exp %23 : vector<8x1024xf32>
      %cst_17 = arith.constant 1.000000e+00 : f32
      %25 = vector.broadcast %cst_17 : f32 to vector<8x1024xf32>
      %26 = arith.subf %24, %25 : vector<8x1024xf32>
      %27 = arith.select %21, %19, %26 : vector<8x1024xi1>, vector<8x1024xf32>
      %c0_18 = arith.constant 0 : index
      %c0_19 = arith.constant 0 : index
      %28 = vector.load %arg5[%c0_18, %c0_19] : memref<8x1024xf32, #tpu.memory_space<vmem>>, vector<8x1024xf32>
      tpu.vector_store %arg5[%c0_18, %c0_19], %27 {strides = array<i32>} : memref<8x1024xf32, #tpu.memory_space<vmem>>, vector<8x1024xf32>,
    } else {
    }
    return
  }
  func.func @transform_0(%arg0: i32, %arg1: i32) -> (i32, i32) {
    %c0_i32 = arith.constant 0 : i32
    %c0_i32_0 = arith.constant 0 : i32
    %c0_i32_1 = arith.constant 0 : i32
    return %c0_i32, %c0_i32_0 : i32, i32
  }
  func.func @transform_1(%arg0: i32, %arg1: i32) -> (i32, i32, i32, i32) {
    %c0_i32 = arith.constant 0 : i32
    %c0_i32_0 = arith.constant 0 : i32
    %c0_i32_1 = arith.constant 0 : i32
    return %arg1, %arg0, %c0_i32, %c0_i32_0 : i32, i32, i32, i32
  }
  func.func @transform_2(%arg0: i32, %arg1: i32) -> (i32, i32) {
    %c0_i32 = arith.constant 0 : i32
    %c0_i32_0 = arith.constant 0 : i32
    return %c0_i32, %arg0 : i32, i32
  }
  func.func @transform_3(%arg0: i32, %arg1: i32) -> (i32, i32) {
    %c0_i32 = arith.constant 0 : i32
    %c0_i32_0 = arith.constant 0 : i32
    return %c0_i32, %arg0 : i32, i32
  }
}

</mosaic_0001>

<bundles_post_ra>
// kernel: deeprl_forward.10
= control target key start
LH: loop header
LB: loop body
LE: loop exit
PB: predicated region body
PF: predicated region fallthrough
CT: control target
= control target key end

     0   :  { %v279_v35 = vlaneseq  ;;  %s535_s1 = inlined_call_operand.vmem [shape: bf16[1,1,256,256], index: 1, kind: input, shape index: {}]   ;;  %s536_s0 = inlined_call_operand.vmem [shape: bf16[8,256], index: 0, kind: input, shape index: {}]   ;;  %s537_s2 = inlined_call_operand.vmem [shape: f32[1,256], index: 2, kind: input, shape index: {}]   ;;  %s538_s3 = inlined_call_operand.vmem [shape: bf16[8,256], index: 3, kind: output, shape index: {}]  }
   0x1   :  { %v356_v0 = vld [vmem:[%s535_s1 + $0x74] ss:$8 sps:$4 sm:$0xff]   ;;  %v358_v1 = vld [vmem:[%s535_s1 + $0x70] ss:$8 sps:$4 sm:$0xff]   ;;  %v359_v2 = vld [vmem:[%s535_s1 + $0x64] ss:$8 sps:$4 sm:$0xff]  }
   0x2   :  { %227 = vmatprep.subr.bf16.mxu0 %v356_v0  ;;  %v361_v3 = vld [vmem:[%s535_s1 + $0x60] ss:$8 sps:$4 sm:$0xff]   ;;  %v362_v4 = vld [vmem:[%s535_s1 + $0x54] ss:$8 sps:$4 sm:$0xff]   ;;  %v364_v5 = vld [vmem:[%s535_s1 + $0x50] ss:$8 sps:$4 sm:$0xff]  }
   0x3   :  { %228 = vmatpush1.bf16.msra.mxu0 %v358_v1  ;;  %v365_v6 = vld [vmem:[%s535_s1 + $0x44] ss:$8 sps:$4 sm:$0xff]   ;;  %v367_v7 = vld [vmem:[%s535_s1 + $0x40] ss:$8 sps:$4 sm:$0xff]   ;;  %v368_v8 = vld [vmem:[%s535_s1 + $0x34] ss:$8 sps:$4 sm:$0xff]  }
   0x4   :  { %229 = vmatprep.subr.bf16.mxu0 %v359_v2  ;;  %v370_v9 = vld [vmem:[%s535_s1 + $0x30] ss:$8 sps:$4 sm:$0xff]   ;;  %v371_v10 = vld [vmem:[%s535_s1 + $0x24] ss:$8 sps:$4 sm:$0xff]   ;;  %v373_v11 = vld [vmem:[%s535_s1 + $0x20] ss:$8 sps:$4 sm:$0xff]  }
   0x5   :  { %v374_v12 = vld [vmem:[%s535_s1 + $0x14] ss:$8 sps:$4 sm:$0xff]   ;;  %v25_v13 = vld [vmem:[%s536_s0] sm:$0xff]  ;;  %v376_v15 = vld [vmem:[%s535_s1 + $0x10] ss:$8 sps:$4 sm:$0xff]   ;;  %v280_v36 = vshrl.u32 %v279_v35, 7 }
   0x6   :  { %v319_v14 = vcombine.high %v25_v13, %v25_v13  ;;  %v377_v16 = vld [vmem:[%s535_s1 + $0x4] ss:$8 sps:$4 sm:$0xff]   ;;  %v379_v17 = vld [vmem:[%s535_s1] ss:$8 sps:$4 sm:$0xff]   ;;  %v380_v18 = vld [vmem:[%s535_s1 + $0xf4] ss:$8 sps:$4 sm:$0xff]   ;;  %v318_v34 = vcombine.low %v25_v13, %v25_v13 }
   0x7   :  { %230 = vmatpush1.bf16.msra.mxu0 %v361_v3  ;;  %v382_v19 = vld [vmem:[%s535_s1 + $0xf0] ss:$8 sps:$4 sm:$0xff]   ;;  %v383_v20 = vld [vmem:[%s535_s1 + $0xe4] ss:$8 sps:$4 sm:$0xff]   ;;  %v385_v21 = vld [vmem:[%s535_s1 + $0xe0] ss:$8 sps:$4 sm:$0xff]  }
   0x8   :  { %231 = vmatprep.subr.bf16.mxu0 %v362_v4  ;;  %259 = vmatprep.mubr.bf16.mxu0 %v319_v14  ;;  %v386_v22 = vld [vmem:[%s535_s1 + $0xd4] ss:$8 sps:$4 sm:$0xff]   ;;  %v388_v23 = vld [vmem:[%s535_s1 + $0xd0] ss:$8 sps:$4 sm:$0xff]   ;;  %v389_v24 = vld [vmem:[%s535_s1 + $0xc4] ss:$8 sps:$4 sm:$0xff]  }
   0x9   :  { %v391_v25 = vld [vmem:[%s535_s1 + $0xc0] ss:$8 sps:$4 sm:$0xff]   ;;  %v392_v26 = vld [vmem:[%s535_s1 + $0xb4] ss:$8 sps:$4 sm:$0xff]   ;;  %v394_v27 = vld [vmem:[%s535_s1 + $0xb0] ss:$8 sps:$4 sm:$0xff]  }
   0xa   :  { %v395_v28 = vld [vmem:[%s535_s1 + $0xa4] ss:$8 sps:$4 sm:$0xff]   ;;  %v397_v29 = vld [vmem:[%s535_s1 + $0xa0] ss:$8 sps:$4 sm:$0xff]   ;;  %v398_v30 = vld [vmem:[%s535_s1 + $0x94] ss:$8 sps:$4 sm:$0xff]  }
   0xb   :  { %232 = vmatpush1.bf16.msra.mxu0 %v364_v5  ;;  %v400_v31 = vld [vmem:[%s535_s1 + $0x90] ss:$8 sps:$4 sm:$0xff]   ;;  %v401_v32 = vld [vmem:[%s535_s1 + $0x84] ss:$8 sps:$4 sm:$0xff]   ;;  %v403_v33 = vld [vmem:[%s535_s1 + $0x80] ss:$8 sps:$4 sm:$0xff]  }
   0xc   :  { %233 = vmatprep.subr.bf16.mxu0 %v365_v6  ;;  %v281_v37 = vsub.s32 0, %v280_v36  ;;  %v277_v38 = vld [vmem:[%s537_s2] sm:$0x3]  ;;  %v285_v39 = vsub.s32 1, %v280_v36 }
   0xe   :  { %v282_v40 = vrot.slane %v277_v38, %v281_v37  ;;  %v286_v41 = vrot.slane %v277_v38, %v285_v39 }
   0xf   :  { %234 = vmatpush1.bf16.msra.mxu0 %v367_v7 }
  0x10   :  { %235 = vmatprep.subr.bf16.mxu0 %v368_v8 }
  0x13   :  { %236 = vmatpush1.bf16.msra.mxu0 %v370_v9 }
  0x14   :  { %237 = vmatprep.subr.bf16.mxu0 %v371_v10 }
  0x17   :  { %238 = vmatpush1.bf16.msra.mxu0 %v373_v11 }
  0x18   :  { %239 = vmatprep.subr.bf16.mxu0 %v374_v12 }
  0x1b   :  { %240 = vmatpush1.bf16.msra.mxu0 %v376_v15 }
  0x1c   :  { %241 = vmatprep.subr.bf16.mxu0 %v377_v16 }
  0x1f   :  { %242 = vmatpush1.bf16.msra.mxu0 %v379_v17 }
  0x20   :  { %243 = vmatprep.subr.bf16.mxu0 %v380_v18 }
  0x23   :  { %244 = vmatpush2.bf16.msra.mxu0 %v382_v19 }
  0x24   :  { %245 = vmatprep.subr.bf16.mxu0 %v383_v20 }
  0x27   :  { %246 = vmatpush2.bf16.msra.mxu0 %v385_v21 }
  0x28   :  { %247 = vmatprep.subr.bf16.mxu0 %v386_v22 }
  0x2b   :  { %248 = vmatpush2.bf16.msra.mxu0 %v388_v23 }
  0x2c   :  { %249 = vmatprep.subr.bf16.mxu0 %v389_v24 }
  0x2f   :  { %250 = vmatpush2.bf16.msra.mxu0 %v391_v25 }
  0x30   :  { %251 = vmatprep.subr.bf16.mxu0 %v392_v26 }
  0x33   :  { %252 = vmatpush2.bf16.msra.mxu0 %v394_v27 }
  0x34   :  { %253 = vmatprep.subr.bf16.mxu0 %v395_v28 }
  0x37   :  { %254 = vmatpush2.bf16.msra.mxu0 %v397_v29 }
  0x38   :  { %255 = vmatprep.subr.bf16.mxu0 %v398_v30 }
  0x3b   :  { %256 = vmatpush2.bf16.msra.mxu0 %v400_v31 }
  0x3c   :  { %257 = vmatprep.subr.bf16.mxu0 %v401_v32 }
  0x3f   :  { %258 = vmatpush2.bf16.msra.mxu0 %v403_v33 }
  0x42   :  { %260 = vmatmul.mubr.bf16.vlgmr.msra.gmra.mxu0 %v318_v34 }
 0x102   :  { %v261_v42 = vpop.f32.mrf.mxu0 }
 0x103   :  { %v289_v43 = vadd.f32 %v282_v40, %v261_v42 }
 0x104   :  { %v263_v44 = vpop.f32.mrf.mxu0 }
 0x105   :  { %v293_v45 = vmin.f32 %v289_v43, 0.0  ;;  %v290_v46 = vadd.f32 %v286_v41, %v263_v44  ;;  %vm291_vm0 = vcmp.gt.f32.partialorder %v289_v43, 0.0 }
 0x106   :  { %v265_v47 = vpop.f32.mrf.mxu0 }
 0x107   :  { %v295_v48 = vmul.f32 1.442695, %v293_v45  ;;  %v294_v49 = vmin.f32 %v290_v46, 0.0  ;;  %vm292_vm1 = vcmp.gt.f32.partialorder %v290_v46, 0.0 }
 0x108   :  { %v266_v50 = vpop.f32.mrf.mxu0 }
 0x109   :  { %406 = vpow2.f32 %v295_v48  ;;  %v297_v51 = vmul.f32 1.442695, %v294_v49 }
 0x10b   :  { %408 = vpow2.f32 %v297_v51 }
 0x116   :  { %v407_v52 = vpop.eup %406 }
 0x117   :  { %v352_v53 = vadd.f32 -1.0, %v407_v52 }
 0x118   :  { %v409_v54 = vpop.eup %408 }
 0x119   :  { %v353_v55 = vadd.f32 -1.0, %v409_v54  ;;  %v301_v56 = vsel %vm291_vm0, %v289_v43, %v352_v53 }
 0x11b   :  { %v302_v57 = vsel %vm292_vm1, %v290_v46, %v353_v55 }
 0x11c   :  { %v355_v58 = vpack.c.bf16 %v302_v57, %v301_v56 }
 0x11e   :  { %311 = vst [vmem:[%s538_s3] sm:$0xff] %v355_v58 }

// kernel: deeprl_forward.9
= control target key start
LH: loop header
LB: loop body
LE: loop exit
PB: predicated region body
PF: predicated region fallthrough
CT: control target
= control target key end

     0   :  { %8 = vsyncpa [#allocation4], 0  ;;  %s450_s12 = smov [#allocation3]   ;;  %s485_s0 = inlined_call_operand.vmem [shape: bf16[8,256], index: 0, kind: input, shape index: {}]   ;;  %s486_s1 = inlined_call_operand.hbm [shape: bf16[1,1,256,256], index: 1, kind: input, shape index: {}]   ;;  %s487_s2 = inlined_call_operand.vmem [shape: f32[1,256], index: 2, kind: input, shape index: {}]   ;;  %s488_s3 = inlined_call_operand.vmem [shape: bf16[8,256], index: 3, kind: output, shape index: {}]  }
   0x1   :  { %s16_s13 = sshll.u32 %s450_s12, 4  ;;  %s17_s13 = int_to_ptr.vmem [resolvable:$true] %s16_s13 }
   0x2   :  { %s436_s14 = scalar_lea.vmem %s17_s13, 4096  ;;  %p441_p1 = scmp.lt.s32.totalorder %s17_s13, %s17_s13 }
   0x3   :  { %p437_p0 = scmp.ne.s32.totalorder %s17_s13, %s436_s14  ;;  %p442_p2 = scmp.lt.s32.totalorder %s436_s14, %s436_s14 }
   0x5   :  { %p443_p3 = por %p442_p2, %p441_p1 }
   0x7   :  { %p444_p4 = pnand %p443_p3, %p437_p0 }
   0x9   :  { %447 = shalt.err (!%p444_p4)
}
   0xa   :  { %s451_s15 = smov 128   ;;  %s452_s16 = smov 8  }
   0xb   :  { %22 = dma.hbm_to_vmem [thread:$0]  %s486_s1, 4096, %s17_s13, [#allocation4], %s451_s15, %s451_s15, %s452_s16  }
   0xc   :  { %448 = dma.done.wait [#allocation4], 4096  }
   0xd   :  { %449 = vsyncadd [#allocation4], 4294963200  ;;  %v374_v0 = vld [vmem:[#allocation3 + $0x74] ss:$8 sps:$4 sm:$0xff]   ;;  %v376_v1 = vld [vmem:[#allocation3 + $0x70] ss:$8 sps:$4 sm:$0xff]   ;;  %v293_v35 = vlaneseq }
   0xe   :  { %241 = vmatprep.subr.bf16.mxu0 %v374_v0  ;;  %v377_v2 = vld [vmem:[#allocation3 + $0x64] ss:$8 sps:$4 sm:$0xff]   ;;  %v379_v3 = vld [vmem:[#allocation3 + $0x60] ss:$8 sps:$4 sm:$0xff]   ;;  %v380_v4 = vld [vmem:[#allocation3 + $0x54] ss:$8 sps:$4 sm:$0xff]  }
   0xf   :  { %242 = vmatpush1.bf16.msra.mxu0 %v376_v1  ;;  %v382_v5 = vld [vmem:[#allocation3 + $0x50] ss:$8 sps:$4 sm:$0xff]   ;;  %v383_v6 = vld [vmem:[#allocation3 + $0x44] ss:$8 sps:$4 sm:$0xff]   ;;  %v385_v7 = vld [vmem:[#allocation3 + $0x40] ss:$8 sps:$4 sm:$0xff]  }
  0x10   :  { %243 = vmatprep.subr.bf16.mxu0 %v377_v2  ;;  %v386_v8 = vld [vmem:[#allocation3 + $0x34] ss:$8 sps:$4 sm:$0xff]   ;;  %v388_v9 = vld [vmem:[#allocation3 + $0x30] ss:$8 sps:$4 sm:$0xff]   ;;  %v389_v10 = vld [vmem:[#allocation3 + $0x24] ss:$8 sps:$4 sm:$0xff]  }
  0x11   :  { %v391_v11 = vld [vmem:[#allocation3 + $0x20] ss:$8 sps:$4 sm:$0xff]   ;;  %v392_v12 = vld [vmem:[#allocation3 + $0x14] ss:$8 sps:$4 sm:$0xff]   ;;  %v394_v15 = vld [vmem:[#allocation3 + $0x10] ss:$8 sps:$4 sm:$0xff]  }
  0x12   :  { %v39_v13 = vld [vmem:[%s485_s0] sm:$0xff]  ;;  %v398_v18 = vld [vmem:[#allocation3 + $0xf4] ss:$8 sps:$4 sm:$0xff]   ;;  %v400_v19 = vld [vmem:[#allocation3 + $0xf0] ss:$8 sps:$4 sm:$0xff]   ;;  %v294_v36 = vshrl.u32 %v293_v35, 7 }
  0x13   :  { %244 = vmatpush1.bf16.msra.mxu0 %v379_v3  ;;  %v334_v14 = vcombine.high %v39_v13, %v39_v13  ;;  %v395_v16 = vld [vmem:[#allocation3 + $0x4] ss:$8 sps:$4 sm:$0xff]   ;;  %v397_v17 = vld [vmem:[#allocation3] ss:$8 sps:$4 sm:$0xff]   ;;  %v404_v22 = vld [vmem:[#allocation3 + $0xd4] ss:$8 sps:$4 sm:$0xff]   ;;  %v333_v34 = vcombine.low %v39_v13, %v39_v13 }
  0x14   :  { %245 = vmatprep.subr.bf16.mxu0 %v380_v4  ;;  %v401_v20 = vld [vmem:[#allocation3 + $0xe4] ss:$8 sps:$4 sm:$0xff]   ;;  %v403_v21 = vld [vmem:[#allocation3 + $0xe0] ss:$8 sps:$4 sm:$0xff]   ;;  %v406_v23 = vld [vmem:[#allocation3 + $0xd0] ss:$8 sps:$4 sm:$0xff]  }
  0x15   :  { %273 = vmatprep.mubr.bf16.mxu0 %v334_v14  ;;  %v407_v24 = vld [vmem:[#allocation3 + $0xc4] ss:$8 sps:$4 sm:$0xff]   ;;  %v409_v25 = vld [vmem:[#allocation3 + $0xc0] ss:$8 sps:$4 sm:$0xff]   ;;  %v410_v26 = vld [vmem:[#allocation3 + $0xb4] ss:$8 sps:$4 sm:$0xff]  }
  0x16   :  { %v412_v27 = vld [vmem:[#allocation3 + $0xb0] ss:$8 sps:$4 sm:$0xff]   ;;  %v413_v28 = vld [vmem:[#allocation3 + $0xa4] ss:$8 sps:$4 sm:$0xff]   ;;  %v415_v29 = vld [vmem:[#allocation3 + $0xa0] ss:$8 sps:$4 sm:$0xff]  }
  0x17   :  { %246 = vmatpush1.bf16.msra.mxu0 %v382_v5  ;;  %v416_v30 = vld [vmem:[#allocation3 + $0x94] ss:$8 sps:$4 sm:$0xff]   ;;  %v418_v31 = vld [vmem:[#allocation3 + $0x90] ss:$8 sps:$4 sm:$0xff]   ;;  %v419_v32 = vld [vmem:[#allocation3 + $0x84] ss:$8 sps:$4 sm:$0xff]  }
  0x18   :  { %247 = vmatprep.subr.bf16.mxu0 %v383_v6  ;;  %v421_v33 = vld [vmem:[#allocation3 + $0x80] ss:$8 sps:$4 sm:$0xff]   ;;  %v295_v37 = vsub.s32 0, %v294_v36  ;;  %v299_v39 = vsub.s32 1, %v294_v36 }
  0x19   :  { %v291_v38 = vld [vmem:[%s487_s2] sm:$0x3] }
  0x1a   :  { %v296_v40 = vrot.slane %v291_v38, %v295_v37  ;;  %v300_v41 = vrot.slane %v291_v38, %v299_v39 }
  0x1b   :  { %248 = vmatpush1.bf16.msra.mxu0 %v385_v7 }
  0x1c   :  { %249 = vmatprep.subr.bf16.mxu0 %v386_v8 }
  0x1f   :  { %250 = vmatpush1.bf16.msra.mxu0 %v388_v9 }
  0x20   :  { %251 = vmatprep.subr.bf16.mxu0 %v389_v10 }
  0x23   :  { %252 = vmatpush1.bf16.msra.mxu0 %v391_v11 }
  0x24   :  { %253 = vmatprep.subr.bf16.mxu0 %v392_v12 }
  0x27   :  { %254 = vmatpush1.bf16.msra.mxu0 %v394_v15 }
  0x28   :  { %255 = vmatprep.subr.bf16.mxu0 %v395_v16 }
  0x2b   :  { %256 = vmatpush1.bf16.msra.mxu0 %v397_v17 }
  0x2c   :  { %257 = vmatprep.subr.bf16.mxu0 %v398_v18 }
  0x2f   :  { %258 = vmatpush2.bf16.msra.mxu0 %v400_v19 }
  0x30   :  { %259 = vmatprep.subr.bf16.mxu0 %v401_v20 }
  0x33   :  { %260 = vmatpush2.bf16.msra.mxu0 %v403_v21 }
  0x34   :  { %261 = vmatprep.subr.bf16.mxu0 %v404_v22 }
  0x37   :  { %262 = vmatpush2.bf16.msra.mxu0 %v406_v23 }
  0x38   :  { %263 = vmatprep.subr.bf16.mxu0 %v407_v24 }
  0x3b   :  { %264 = vmatpush2.bf16.msra.mxu0 %v409_v25 }
  0x3c   :  { %265 = vmatprep.subr.bf16.mxu0 %v410_v26 }
  0x3f   :  { %266 = vmatpush2.bf16.msra.mxu0 %v412_v27 }
  0x40   :  { %267 = vmatprep.subr.bf16.mxu0 %v413_v28 }
  0x43   :  { %268 = vmatpush2.bf16.msra.mxu0 %v415_v29 }
  0x44   :  { %269 = vmatprep.subr.bf16.mxu0 %v416_v30 }
  0x47   :  { %270 = vmatpush2.bf16.msra.mxu0 %v418_v31 }
  0x48   :  { %271 = vmatprep.subr.bf16.mxu0 %v419_v32 }
  0x4b   :  { %272 = vmatpush2.bf16.msra.mxu0 %v421_v33 }
  0x4e   :  { %274 = vmatmul.mubr.bf16.vlgmr.msra.gmra.mxu0 %v333_v34 }
 0x10e   :  { %v275_v42 = vpop.f32.mrf.mxu0 }
 0x10f   :  { %v303_v43 = vadd.f32 %v296_v40, %v275_v42 }
 0x110   :  { %v277_v44 = vpop.f32.mrf.mxu0 }
 0x111   :  { %v307_v45 = vmin.f32 %v303_v43, 0.0  ;;  %v304_v46 = vadd.f32 %v300_v41, %v277_v44  ;;  %vm305_vm0 = vcmp.gt.f32.partialorder %v303_v43, 0.0 }
 0x112   :  { %v279_v47 = vpop.f32.mrf.mxu0 }
 0x113   :  { %v309_v48 = vmul.f32 1.442695, %v307_v45  ;;  %v308_v49 = vmin.f32 %v304_v46, 0.0  ;;  %vm306_vm1 = vcmp.gt.f32.partialorder %v304_v46, 0.0 }
 0x114   :  { %v280_v50 = vpop.f32.mrf.mxu0 }
 0x115   :  { %424 = vpow2.f32 %v309_v48  ;;  %v311_v51 = vmul.f32 1.442695, %v308_v49 }
 0x117   :  { %426 = vpow2.f32 %v311_v51 }
 0x122   :  { %v425_v52 = vpop.eup %424 }
 0x123   :  { %v367_v53 = vadd.f32 -1.0, %v425_v52 }
 0x124   :  { %v427_v54 = vpop.eup %426 }
 0x125   :  { %v368_v55 = vadd.f32 -1.0, %v427_v54  ;;  %v315_v56 = vsel %vm305_vm0, %v303_v43, %v367_v53 }
 0x127   :  { %v316_v57 = vsel %vm306_vm1, %v304_v46, %v368_v55 }
 0x128   :  { %v370_v58 = vpack.c.bf16 %v316_v57, %v315_v56 }
 0x12a   :  { %325 = vst [vmem:[%s488_s3] sm:$0xff] %v370_v58 }
 0x12b   :  { %330 = vsyncpa [#allocation4], 1 }

// kernel: deeprl_forward.8
= control target key start
LH: loop header
LB: loop body
LE: loop exit
PB: predicated region body
PF: predicated region fallthrough
CT: control target
= control target key end

     0   :  { %8 = vsyncpa [#allocation4], 0  ;;  %s850_s0 = inlined_call_operand.vmem [shape: bf16[8,512], index: 0, kind: input, shape index: {}]   ;;  %s851_s1 = inlined_call_operand.hbm [shape: bf16[1,1,512,256], index: 1, kind: input, shape index: {}]   ;;  %s852_s2 = inlined_call_operand.hbm [shape: f32[1,256], index: 2, kind: input, shape index: {}]   ;;  %s853_s3 = inlined_call_operand.vmem [shape: bf16[8,256], index: 3, kind: output, shape index: {}]  }
   0x1   :  { %9 = vsyncpa [#allocation6], 0  ;;  %s811_s12 = smov [#allocation3]  }
   0x2   :  { %s17_s13 = sshll.u32 %s811_s12, 4  ;;  %s18_s13 = int_to_ptr.vmem [resolvable:$true] %s17_s13 }
   0x3   :  { %s775_s14 = scalar_lea.vmem %s18_s13, 8192  ;;  %p780_p1 = scmp.lt.s32.totalorder %s18_s13, %s18_s13 }
   0x4   :  { %p776_p0 = scmp.ne.s32.totalorder %s18_s13, %s775_s14  ;;  %p781_p2 = scmp.lt.s32.totalorder %s775_s14, %s775_s14 }
   0x6   :  { %p782_p3 = por %p781_p2, %p780_p1 }
   0x8   :  { %p783_p4 = pnand %p782_p3, %p776_p0 }
   0xa   :  { %786 = shalt.err (!%p783_p4)
}
   0xb   :  { %s812_s15 = smov 128   ;;  %s813_s16 = smov 8  }
   0xc   :  { %23 = dma.hbm_to_vmem [thread:$0]  %s851_s1, 8192, %s18_s13, [#allocation4], %s812_s15, %s812_s15, %s813_s16  }
   0xd   :  { %s814_s19 = smov [#allocation5]  }
   0xe   :  { %s30_s20 = sshll.u32 %s814_s19, 4  ;;  %s31_s20 = int_to_ptr.vmem [resolvable:$true] %s30_s20 }
   0xf   :  { %s795_s21 = scalar_lea.vmem %s31_s20, 32  ;;  %p800_p6 = scmp.lt.s32.totalorder %s31_s20, %s31_s20 }
  0x10   :  { %p796_p5 = scmp.ne.s32.totalorder %s31_s20, %s795_s21  ;;  %p801_p7 = scmp.lt.s32.totalorder %s795_s21, %s795_s21 }
  0x12   :  { %p802_p8 = por %p801_p7, %p800_p6 }
  0x14   :  { %p803_p9 = pnand %p802_p8, %p796_p5 }
  0x16   :  { %806 = shalt.err (!%p803_p9)
}
  0x17   :  { %33 = dma.hbm_to_vmem [thread:$0]  %s852_s2, 32, %s31_s20, [#allocation6]  }
  0x18   :  { %807 = dma.done.wait [#allocation4], 8192  }
  0x19   :  { %808 = vsyncadd [#allocation4], 4294959104 }
  0x1a   :  { %809 = dma.done.wait [#allocation6], 32  }
  0x1b   :  { %810 = vsyncadd [#allocation6], 4294967264  ;;  %v663_v0 = vld [vmem:[#allocation3 + $0x74] ss:$8 sps:$4 sm:$0xff]   ;;  %v667_v2 = vld [vmem:[#allocation3 + $0x70] ss:$8 sps:$4 sm:$0xff]  }
  0x1c   :  { %v665_v1 = vld [vmem:[#allocation3 + $0x174] ss:$8 sps:$4 sm:$0xff]   ;;  %453 = vmatprep.subr.bf16.mxu0 %v663_v0  ;;  %v668_v3 = vld [vmem:[#allocation3 + $0x170] ss:$8 sps:$4 sm:$0xff]   ;;  %v669_v4 = vld [vmem:[#allocation3 + $0x64] ss:$8 sps:$4 sm:$0xff]  }
  0x1d   :  { %494 = vmatprep.subr.bf16.mxu1 %v665_v1  ;;  %454 = vmatpush1.bf16.msra.mxu0 %v667_v2  ;;  %v671_v5 = vld [vmem:[#allocation3 + $0x164] ss:$8 sps:$4 sm:$0xff]   ;;  %v673_v6 = vld [vmem:[#allocation3 + $0x60] ss:$8 sps:$4 sm:$0xff]   ;;  %v675_v8 = vld [vmem:[#allocation3 + $0x54] ss:$8 sps:$4 sm:$0xff]  }
  0x1e   :  { %495 = vmatpush1.bf16.msra.mxu1 %v668_v3  ;;  %455 = vmatprep.subr.bf16.mxu0 %v669_v4  ;;  %v674_v7 = vld [vmem:[#allocation3 + $0x160] ss:$8 sps:$4 sm:$0xff]   ;;  %v677_v9 = vld [vmem:[#allocation3 + $0x154] ss:$8 sps:$4 sm:$0xff]   ;;  %v679_v10 = vld [vmem:[#allocation3 + $0x50] ss:$8 sps:$4 sm:$0xff]  }
  0x1f   :  { %496 = vmatprep.subr.bf16.mxu1 %v671_v5  ;;  %v680_v11 = vld [vmem:[#allocation3 + $0x150] ss:$8 sps:$4 sm:$0xff]   ;;  %v681_v12 = vld [vmem:[#allocation3 + $0x44] ss:$8 sps:$4 sm:$0xff]   ;;  %v685_v14 = vld [vmem:[#allocation3 + $0x40] ss:$8 sps:$4 sm:$0xff]  }
  0x20   :  { %v683_v13 = vld [vmem:[#allocation3 + $0x144] ss:$8 sps:$4 sm:$0xff]   ;;  %v686_v15 = vld [vmem:[#allocation3 + $0x140] ss:$8 sps:$4 sm:$0xff]   ;;  %v687_v16 = vld [vmem:[#allocation3 + $0x34] ss:$8 sps:$4 sm:$0xff]  }
  0x21   :  { %456 = vmatpush1.bf16.msra.mxu0 %v673_v6  ;;  %v689_v17 = vld [vmem:[#allocation3 + $0x134] ss:$8 sps:$4 sm:$0xff]   ;;  %v691_v18 = vld [vmem:[#allocation3 + $0x30] ss:$8 sps:$4 sm:$0xff]   ;;  %v693_v20 = vld [vmem:[#allocation3 + $0x24] ss:$8 sps:$4 sm:$0xff]   ;;  %v546_v6 = vlaneseq }
  0x22   :  { %497 = vmatpush1.bf16.msra.mxu1 %v674_v7  ;;  %457 = vmatprep.subr.bf16.mxu0 %v675_v8  ;;  %v692_v19 = vld [vmem:[#allocation3 + $0x130] ss:$8 sps:$4 sm:$0xff]   ;;  %v695_v21 = vld [vmem:[#allocation3 + $0x124] ss:$8 sps:$4 sm:$0xff]   ;;  %v697_v22 = vld [vmem:[#allocation3 + $0x20] ss:$8 sps:$4 sm:$0xff]  }
  0x23   :  { %498 = vmatprep.subr.bf16.mxu1 %v677_v9  ;;  %v698_v23 = vld [vmem:[#allocation3 + $0x120] ss:$8 sps:$4 sm:$0xff]   ;;  %v699_v24 = vld [vmem:[#allocation3 + $0x14] ss:$8 sps:$4 sm:$0xff]   ;;  %v703_v26 = vld [vmem:[#allocation3 + $0x10] ss:$8 sps:$4 sm:$0xff]  }
  0x24   :  { %v701_v25 = vld [vmem:[#allocation3 + $0x114] ss:$8 sps:$4 sm:$0xff]   ;;  %v704_v27 = vld [vmem:[#allocation3 + $0x110] ss:$8 sps:$4 sm:$0xff]   ;;  %v705_v28 = vld [vmem:[#allocation3 + $0x4] ss:$8 sps:$4 sm:$0xff]  }
  0x25   :  { %458 = vmatpush1.bf16.msra.mxu0 %v679_v10  ;;  %v707_v29 = vld [vmem:[#allocation3 + $0x104] ss:$8 sps:$4 sm:$0xff]   ;;  %v709_v30 = vld [vmem:[#allocation3] ss:$8 sps:$4 sm:$0xff]   ;;  %v711_v32 = vld [vmem:[#allocation3 + $0xf4] ss:$8 sps:$4 sm:$0xff]  }
  0x26   :  { %499 = vmatpush1.bf16.msra.mxu1 %v680_v11  ;;  %459 = vmatprep.subr.bf16.mxu0 %v681_v12  ;;  %v710_v31 = vld [vmem:[#allocation3 + $0x100] ss:$8 sps:$4 sm:$0xff]   ;;  %v713_v33 = vld [vmem:[#allocation3 + $0x1f4] ss:$8 sps:$4 sm:$0xff]   ;;  %v715_v34 = vld [vmem:[#allocation3 + $0xf0] ss:$8 sps:$4 sm:$0xff]  }
  0x27   :  { %500 = vmatprep.subr.bf16.mxu1 %v683_v13  ;;  %v716_v35 = vld [vmem:[#allocation3 + $0x1f0] ss:$8 sps:$4 sm:$0xff]   ;;  %v717_v36 = vld [vmem:[#allocation3 + $0xe4] ss:$8 sps:$4 sm:$0xff]   ;;  %v721_v38 = vld [vmem:[#allocation3 + $0xe0] ss:$8 sps:$4 sm:$0xff]  }
  0x28   :  { %v719_v37 = vld [vmem:[#allocation3 + $0x1e4] ss:$8 sps:$4 sm:$0xff]   ;;  %v722_v39 = vld [vmem:[#allocation3 + $0x1e0] ss:$8 sps:$4 sm:$0xff]   ;;  %v723_v40 = vld [vmem:[#allocation3 + $0xd4] ss:$8 sps:$4 sm:$0xff]  }
  0x29   :  { %460 = vmatpush1.bf16.msra.mxu0 %v685_v14  ;;  %v725_v41 = vld [vmem:[#allocation3 + $0x1d4] ss:$8 sps:$4 sm:$0xff]   ;;  %v727_v42 = vld [vmem:[#allocation3 + $0xd0] ss:$8 sps:$4 sm:$0xff]   ;;  %v729_v44 = vld [vmem:[#allocation3 + $0xc4] ss:$8 sps:$4 sm:$0xff]  }
  0x2a   :  { %501 = vmatpush1.bf16.msra.mxu1 %v686_v15  ;;  %461 = vmatprep.subr.bf16.mxu0 %v687_v16  ;;  %v728_v43 = vld [vmem:[#allocation3 + $0x1d0] ss:$8 sps:$4 sm:$0xff]   ;;  %v731_v45 = vld [vmem:[#allocation3 + $0x1c4] ss:$8 sps:$4 sm:$0xff]   ;;  %v733_v49 = vld [vmem:[#allocation3 + $0xc0] ss:$8 sps:$4 sm:$0xff]  }
  0x2b   :  { %502 = vmatprep.subr.bf16.mxu1 %v689_v17  ;;  %v51_v46 = vld [vmem:[%s850_s0] sm:$0xff]  ;;  %v52_v48 = vld [vmem:[%s850_s0 + $0x8] sm:$0xff]  ;;  %v735_v52 = vld [vmem:[#allocation3 + $0xb4] ss:$8 sps:$4 sm:$0xff]   ;;  %v547_v7 = vshrl.u32 %v546_v6, 7 }
  0x2c   :  { %v588_v47 = vcombine.high %v51_v46, %v51_v46  ;;  %v734_v50 = vld [vmem:[#allocation3 + $0x1c0] ss:$8 sps:$4 sm:$0xff]   ;;  %v590_v51 = vcombine.high %v52_v48, %v52_v48  ;;  %v737_v53 = vld [vmem:[#allocation3 + $0x1b4] ss:$8 sps:$4 sm:$0xff]   ;;  %v739_v54 = vld [vmem:[#allocation3 + $0xb0] ss:$8 sps:$4 sm:$0xff]   ;;  %v587_v4 = vcombine.low %v51_v46, %v51_v46  ;;  %v589_v5 = vcombine.low %v52_v48, %v52_v48 }
  0x2d   :  { %462 = vmatpush1.bf16.msra.mxu0 %v691_v18  ;;  %v740_v55 = vld [vmem:[#allocation3 + $0x1b0] ss:$8 sps:$4 sm:$0xff]   ;;  %v741_v56 = vld [vmem:[#allocation3 + $0xa4] ss:$8 sps:$4 sm:$0xff]   ;;  %v745_v58 = vld [vmem:[#allocation3 + $0xa0] ss:$8 sps:$4 sm:$0xff]  }
  0x2e   :  { %503 = vmatpush1.bf16.msra.mxu1 %v692_v19  ;;  %463 = vmatprep.subr.bf16.mxu0 %v693_v20  ;;  %v743_v57 = vld [vmem:[#allocation3 + $0x1a4] ss:$8 sps:$4 sm:$0xff]   ;;  %v746_v59 = vld [vmem:[#allocation3 + $0x1a0] ss:$8 sps:$4 sm:$0xff]   ;;  %v747_v60 = vld [vmem:[#allocation3 + $0x94] ss:$8 sps:$4 sm:$0xff]  }
  0x2f   :  { %504 = vmatprep.subr.bf16.mxu1 %v695_v21  ;;  %485 = vmatprep.mubr.bf16.mxu0 %v588_v47  ;;  %v749_v61 = vld [vmem:[#allocation3 + $0x194] ss:$8 sps:$4 sm:$0xff]   ;;  %v751_v62 = vld [vmem:[#allocation3 + $0x90] ss:$8 sps:$4 sm:$0xff]   ;;  %v753_v0 = vld [vmem:[#allocation3 + $0x84] ss:$8 sps:$4 sm:$0xff]  }
  0x30   :  { %526 = vmatprep.mubr.bf16.mxu1 %v590_v51  ;;  %v752_v63 = vld [vmem:[#allocation3 + $0x190] ss:$8 sps:$4 sm:$0xff]   ;;  %v755_v1 = vld [vmem:[#allocation3 + $0x184] ss:$8 sps:$4 sm:$0xff]   ;;  %v757_v2 = vld [vmem:[#allocation3 + $0x80] ss:$8 sps:$4 sm:$0xff]  }
  0x31   :  { %464 = vmatpush1.bf16.msra.mxu0 %v697_v22  ;;  %v758_v3 = vld [vmem:[#allocation3 + $0x180] ss:$8 sps:$4 sm:$0xff]   ;;  %v548_v8 = vsub.s32 0, %v547_v7  ;;  %v552_v10 = vsub.s32 1, %v547_v7 }
  0x32   :  { %505 = vmatpush1.bf16.msra.mxu1 %v698_v23  ;;  %465 = vmatprep.subr.bf16.mxu0 %v699_v24  ;;  %v544_v9 = vld [vmem:[#allocation5] sm:$0x3] }
  0x33   :  { %506 = vmatprep.subr.bf16.mxu1 %v701_v25  ;;  %v549_v11 = vrot.slane %v544_v9, %v548_v8  ;;  %v553_v15 = vrot.slane %v544_v9, %v552_v10 }
  0x35   :  { %466 = vmatpush1.bf16.msra.mxu0 %v703_v26 }
  0x36   :  { %507 = vmatpush1.bf16.msra.mxu1 %v704_v27  ;;  %467 = vmatprep.subr.bf16.mxu0 %v705_v28 }
  0x37   :  { %508 = vmatprep.subr.bf16.mxu1 %v707_v29 }
  0x39   :  { %468 = vmatpush1.bf16.msra.mxu0 %v709_v30 }
  0x3a   :  { %509 = vmatpush1.bf16.msra.mxu1 %v710_v31  ;;  %469 = vmatprep.subr.bf16.mxu0 %v711_v32 }
  0x3b   :  { %510 = vmatprep.subr.bf16.mxu1 %v713_v33 }
  0x3d   :  { %470 = vmatpush2.bf16.msra.mxu0 %v715_v34 }
  0x3e   :  { %511 = vmatpush2.bf16.msra.mxu1 %v716_v35  ;;  %471 = vmatprep.subr.bf16.mxu0 %v717_v36 }
  0x3f   :  { %512 = vmatprep.subr.bf16.mxu1 %v719_v37 }
  0x41   :  { %472 = vmatpush2.bf16.msra.mxu0 %v721_v38 }
  0x42   :  { %513 = vmatpush2.bf16.msra.mxu1 %v722_v39  ;;  %473 = vmatprep.subr.bf16.mxu0 %v723_v40 }
  0x43   :  { %514 = vmatprep.subr.bf16.mxu1 %v725_v41 }
  0x45   :  { %474 = vmatpush2.bf16.msra.mxu0 %v727_v42 }
  0x46   :  { %515 = vmatpush2.bf16.msra.mxu1 %v728_v43  ;;  %475 = vmatprep.subr.bf16.mxu0 %v729_v44 }
  0x47   :  { %516 = vmatprep.subr.bf16.mxu1 %v731_v45 }
  0x49   :  { %476 = vmatpush2.bf16.msra.mxu0 %v733_v49 }
  0x4a   :  { %517 = vmatpush2.bf16.msra.mxu1 %v734_v50  ;;  %477 = vmatprep.subr.bf16.mxu0 %v735_v52 }
  0x4b   :  { %518 = vmatprep.subr.bf16.mxu1 %v737_v53 }
  0x4d   :  { %478 = vmatpush2.bf16.msra.mxu0 %v739_v54 }
  0x4e   :  { %519 = vmatpush2.bf16.msra.mxu1 %v740_v55  ;;  %479 = vmatprep.subr.bf16.mxu0 %v741_v56 }
  0x4f   :  { %520 = vmatprep.subr.bf16.mxu1 %v743_v57 }
  0x51   :  { %480 = vmatpush2.bf16.msra.mxu0 %v745_v58 }
  0x52   :  { %521 = vmatpush2.bf16.msra.mxu1 %v746_v59  ;;  %481 = vmatprep.subr.bf16.mxu0 %v747_v60 }
  0x53   :  { %522 = vmatprep.subr.bf16.mxu1 %v749_v61 }
  0x55   :  { %482 = vmatpush2.bf16.msra.mxu0 %v751_v62 }
  0x56   :  { %523 = vmatpush2.bf16.msra.mxu1 %v752_v63  ;;  %483 = vmatprep.subr.bf16.mxu0 %v753_v0 }
  0x57   :  { %524 = vmatprep.subr.bf16.mxu1 %v755_v1 }
  0x59   :  { %484 = vmatpush2.bf16.msra.mxu0 %v757_v2 }
  0x5a   :  { %525 = vmatpush2.bf16.msra.mxu1 %v758_v3 }
  0x5c   :  { %486 = vmatmul.mubr.bf16.vlgmr.msra.gmra.mxu0 %v587_v4 }
  0x5d   :  { %527 = vmatmul.mubr.bf16.vlgmr.msra.gmra.mxu1 %v589_v5 }
 0x11c   :  { %v487_v12 = vpop.f32.mrf.mxu0 }
 0x11d   :  { %v528_v13 = vpop.f32.mrf.mxu1 }
 0x11e   :  { %v529_v14 = vadd.f32 %v528_v13, %v487_v12  ;;  %v489_v16 = vpop.f32.mrf.mxu0 }
 0x11f   :  { %v530_v17 = vpop.f32.mrf.mxu1 }
 0x120   :  { %v556_v18 = vadd.f32 %v549_v11, %v529_v14  ;;  %v531_v19 = vadd.f32 %v530_v17, %v489_v16  ;;  %v491_v20 = vpop.f32.mrf.mxu0 }
 0x121   :  { %v532_v21 = vpop.f32.mrf.mxu1 }
 0x122   :  { %v560_v22 = vmin.f32 %v556_v18, 0.0  ;;  %v557_v23 = vadd.f32 %v553_v15, %v531_v19  ;;  %v492_v24 = vpop.f32.mrf.mxu0  ;;  %vm558_vm0 = vcmp.gt.f32.partialorder %v556_v18, 0.0 }
 0x123   :  { %v533_v25 = vpop.f32.mrf.mxu1 }
 0x124   :  { %v562_v26 = vmul.f32 1.442695, %v560_v22  ;;  %v561_v27 = vmin.f32 %v557_v23, 0.0  ;;  %vm559_vm1 = vcmp.gt.f32.partialorder %v557_v23, 0.0 }
 0x126   :  { %763 = vpow2.f32 %v562_v26  ;;  %v564_v28 = vmul.f32 1.442695, %v561_v27 }
 0x128   :  { %765 = vpow2.f32 %v564_v28 }
 0x133   :  { %v764_v29 = vpop.eup %763 }
 0x134   :  { %v655_v30 = vadd.f32 -1.0, %v764_v29 }
 0x135   :  { %v766_v31 = vpop.eup %765 }
 0x136   :  { %v656_v32 = vadd.f32 -1.0, %v766_v31  ;;  %v568_v33 = vsel %vm558_vm0, %v556_v18, %v655_v30 }
 0x138   :  { %v569_v34 = vsel %vm559_vm1, %v557_v23, %v656_v32 }
 0x139   :  { %v658_v35 = vpack.c.bf16 %v569_v34, %v568_v33 }
 0x13b   :  { %578 = vst [vmem:[%s853_s3] sm:$0xff] %v658_v35 }
 0x13c   :  { %583 = vsyncpa [#allocation4], 1 }
 0x13d   :  { %584 = vsyncpa [#allocation6], 1 }

// kernel: deeprl_forward.7
= control target key start
LH: loop header
LB: loop body
LE: loop exit
PB: predicated region body
PF: predicated region fallthrough
CT: control target
= control target key end

     0   :  { %8 = vsyncpa [#allocation4], 0  ;;  %s889_s0 = inlined_call_operand.vmem [shape: bf16[8,256], index: 0, kind: input, shape index: {}]   ;;  %s890_s1 = inlined_call_operand.hbm [shape: bf16[1,1,256,512], index: 1, kind: input, shape index: {}]   ;;  %s891_s2 = inlined_call_operand.hbm [shape: f32[1,512], index: 2, kind: input, shape index: {}]   ;;  %s892_s3 = inlined_call_operand.vmem [shape: bf16[8,512], index: 3, kind: output, shape index: {}]  }
   0x1   :  { %9 = vsyncpa [#allocation6], 0  ;;  %s850_s12 = smov [#allocation3]  }
   0x2   :  { %s17_s13 = sshll.u32 %s850_s12, 4  ;;  %s18_s13 = int_to_ptr.vmem [resolvable:$true] %s17_s13 }
   0x3   :  { %s814_s14 = scalar_lea.vmem %s18_s13, 8192  ;;  %p819_p1 = scmp.lt.s32.totalorder %s18_s13, %s18_s13 }
   0x4   :  { %p815_p0 = scmp.ne.s32.totalorder %s18_s13, %s814_s14  ;;  %p820_p2 = scmp.lt.s32.totalorder %s814_s14, %s814_s14 }
   0x6   :  { %p821_p3 = por %p820_p2, %p819_p1 }
   0x8   :  { %p822_p4 = pnand %p821_p3, %p815_p0 }
   0xa   :  { %825 = shalt.err (!%p822_p4)
}
   0xb   :  { %s851_s15 = smov 256   ;;  %s852_s16 = smov 16  }
   0xc   :  { %23 = dma.hbm_to_vmem [thread:$0]  %s890_s1, 8192, %s18_s13, [#allocation4], %s851_s15, %s851_s15, %s852_s16  }
   0xd   :  { %s853_s19 = smov [#allocation5]  }
   0xe   :  { %s30_s20 = sshll.u32 %s853_s19, 4  ;;  %s31_s20 = int_to_ptr.vmem [resolvable:$true] %s30_s20 }
   0xf   :  { %s834_s21 = scalar_lea.vmem %s31_s20, 64  ;;  %p839_p6 = scmp.lt.s32.totalorder %s31_s20, %s31_s20 }
  0x10   :  { %p835_p5 = scmp.ne.s32.totalorder %s31_s20, %s834_s21  ;;  %p840_p7 = scmp.lt.s32.totalorder %s834_s21, %s834_s21 }
  0x12   :  { %p841_p8 = por %p840_p7, %p839_p6 }
  0x14   :  { %p842_p9 = pnand %p841_p8, %p835_p5 }
  0x16   :  { %845 = shalt.err (!%p842_p9)
}
  0x17   :  { %33 = dma.hbm_to_vmem [thread:$0]  %s891_s2, 64, %s31_s20, [#allocation6]  }
  0x18   :  { %846 = dma.done.wait [#allocation4], 8192  }
  0x19   :  { %847 = vsyncadd [#allocation4], 4294959104 }
  0x1a   :  { %848 = dma.done.wait [#allocation6], 64  }
  0x1b   :  { %849 = vsyncadd [#allocation6], 4294967232  ;;  %v700_v0 = vld [vmem:[#allocation3 + $0xe4] ss:$16 sps:$4 sm:$0xff]   ;;  %v702_v1 = vld [vmem:[#allocation3 + $0xec] ss:$16 sps:$4 sm:$0xff]  }
  0x1c   :  { %449 = vmatprep.subr.bf16.mxu0 %v700_v0  ;;  %v704_v2 = vld [vmem:[#allocation3 + $0xe0] ss:$16 sps:$4 sm:$0xff]   ;;  %v705_v3 = vld [vmem:[#allocation3 + $0xe8] ss:$16 sps:$4 sm:$0xff]   ;;  %490 = vmatprep.subr.bf16.mxu1 %v702_v1  ;;  %v706_v4 = vld [vmem:[#allocation3 + $0xc4] ss:$16 sps:$4 sm:$0xff]  }
  0x1d   :  { %450 = vmatpush1.bf16.msra.mxu0 %v704_v2  ;;  %491 = vmatpush1.bf16.msra.mxu1 %v705_v3  ;;  %v708_v5 = vld [vmem:[#allocation3 + $0xcc] ss:$16 sps:$4 sm:$0xff]   ;;  %v710_v6 = vld [vmem:[#allocation3 + $0xc0] ss:$16 sps:$4 sm:$0xff]   ;;  %v711_v7 = vld [vmem:[#allocation3 + $0xc8] ss:$16 sps:$4 sm:$0xff]   ;;  %v548_v3 = vlaneseq }
  0x1e   :  { %451 = vmatprep.subr.bf16.mxu0 %v706_v4  ;;  %492 = vmatprep.subr.bf16.mxu1 %v708_v5  ;;  %v712_v8 = vld [vmem:[#allocation3 + $0xa4] ss:$16 sps:$4 sm:$0xff]   ;;  %v714_v9 = vld [vmem:[#allocation3 + $0xac] ss:$16 sps:$4 sm:$0xff]   ;;  %v716_v10 = vld [vmem:[#allocation3 + $0xa0] ss:$16 sps:$4 sm:$0xff]  }
  0x1f   :  { %v717_v11 = vld [vmem:[#allocation3 + $0xa8] ss:$16 sps:$4 sm:$0xff]   ;;  %v718_v12 = vld [vmem:[#allocation3 + $0x84] ss:$16 sps:$4 sm:$0xff]   ;;  %v720_v13 = vld [vmem:[#allocation3 + $0x8c] ss:$16 sps:$4 sm:$0xff]  }
  0x20   :  { %v722_v14 = vld [vmem:[#allocation3 + $0x80] ss:$16 sps:$4 sm:$0xff]   ;;  %v723_v15 = vld [vmem:[#allocation3 + $0x88] ss:$16 sps:$4 sm:$0xff]   ;;  %v724_v16 = vld [vmem:[#allocation3 + $0x64] ss:$16 sps:$4 sm:$0xff]  }
  0x21   :  { %452 = vmatpush1.bf16.msra.mxu0 %v710_v6  ;;  %493 = vmatpush1.bf16.msra.mxu1 %v711_v7  ;;  %v726_v17 = vld [vmem:[#allocation3 + $0x6c] ss:$16 sps:$4 sm:$0xff]   ;;  %v728_v18 = vld [vmem:[#allocation3 + $0x60] ss:$16 sps:$4 sm:$0xff]   ;;  %v729_v19 = vld [vmem:[#allocation3 + $0x68] ss:$16 sps:$4 sm:$0xff]  }
  0x22   :  { %453 = vmatprep.subr.bf16.mxu0 %v712_v8  ;;  %494 = vmatprep.subr.bf16.mxu1 %v714_v9  ;;  %v730_v20 = vld [vmem:[#allocation3 + $0x44] ss:$16 sps:$4 sm:$0xff]   ;;  %v732_v21 = vld [vmem:[#allocation3 + $0x4c] ss:$16 sps:$4 sm:$0xff]   ;;  %v734_v22 = vld [vmem:[#allocation3 + $0x40] ss:$16 sps:$4 sm:$0xff]  }
  0x23   :  { %v735_v23 = vld [vmem:[#allocation3 + $0x48] ss:$16 sps:$4 sm:$0xff]   ;;  %v736_v24 = vld [vmem:[#allocation3 + $0x24] ss:$16 sps:$4 sm:$0xff]   ;;  %v738_v25 = vld [vmem:[#allocation3 + $0x2c] ss:$16 sps:$4 sm:$0xff]  }
  0x24   :  { %v740_v26 = vld [vmem:[#allocation3 + $0x20] ss:$16 sps:$4 sm:$0xff]   ;;  %v741_v27 = vld [vmem:[#allocation3 + $0x28] ss:$16 sps:$4 sm:$0xff]   ;;  %v742_v28 = vld [vmem:[#allocation3 + $0x4] ss:$16 sps:$4 sm:$0xff]  }
  0x25   :  { %454 = vmatpush1.bf16.msra.mxu0 %v716_v10  ;;  %495 = vmatpush1.bf16.msra.mxu1 %v717_v11  ;;  %v744_v29 = vld [vmem:[#allocation3 + $0xc] ss:$16 sps:$4 sm:$0xff]   ;;  %v746_v30 = vld [vmem:[#allocation3] ss:$16 sps:$4 sm:$0xff]   ;;  %v747_v31 = vld [vmem:[#allocation3 + $0x8] ss:$16 sps:$4 sm:$0xff]  }
  0x26   :  { %455 = vmatprep.subr.bf16.mxu0 %v718_v12  ;;  %496 = vmatprep.subr.bf16.mxu1 %v720_v13  ;;  %v748_v32 = vld [vmem:[#allocation3 + $0x1e4] ss:$16 sps:$4 sm:$0xff]   ;;  %v750_v33 = vld [vmem:[#allocation3 + $0x1ec] ss:$16 sps:$4 sm:$0xff]   ;;  %v752_v34 = vld [vmem:[#allocation3 + $0x1e0] ss:$16 sps:$4 sm:$0xff]  }
  0x27   :  { %v753_v35 = vld [vmem:[#allocation3 + $0x1e8] ss:$16 sps:$4 sm:$0xff]   ;;  %v754_v36 = vld [vmem:[#allocation3 + $0x1c4] ss:$16 sps:$4 sm:$0xff]   ;;  %v756_v37 = vld [vmem:[#allocation3 + $0x1cc] ss:$16 sps:$4 sm:$0xff]  }
  0x28   :  { %v758_v38 = vld [vmem:[#allocation3 + $0x1c0] ss:$16 sps:$4 sm:$0xff]   ;;  %v759_v39 = vld [vmem:[#allocation3 + $0x1c8] ss:$16 sps:$4 sm:$0xff]   ;;  %v760_v40 = vld [vmem:[#allocation3 + $0x1a4] ss:$16 sps:$4 sm:$0xff]  }
  0x29   :  { %456 = vmatpush1.bf16.msra.mxu0 %v722_v14  ;;  %497 = vmatpush1.bf16.msra.mxu1 %v723_v15  ;;  %v762_v41 = vld [vmem:[#allocation3 + $0x1ac] ss:$16 sps:$4 sm:$0xff]   ;;  %v764_v42 = vld [vmem:[#allocation3 + $0x1a0] ss:$16 sps:$4 sm:$0xff]   ;;  %v765_v43 = vld [vmem:[#allocation3 + $0x1a8] ss:$16 sps:$4 sm:$0xff]  }
  0x2a   :  { %457 = vmatprep.subr.bf16.mxu0 %v724_v16  ;;  %498 = vmatprep.subr.bf16.mxu1 %v726_v17  ;;  %v766_v44 = vld [vmem:[#allocation3 + $0x184] ss:$16 sps:$4 sm:$0xff]   ;;  %v768_v45 = vld [vmem:[#allocation3 + $0x18c] ss:$16 sps:$4 sm:$0xff]   ;;  %v770_v48 = vld [vmem:[#allocation3 + $0x180] ss:$16 sps:$4 sm:$0xff]  }
  0x2b   :  { %v53_v46 = vld [vmem:[%s889_s0] sm:$0xff]  ;;  %v771_v49 = vld [vmem:[#allocation3 + $0x188] ss:$16 sps:$4 sm:$0xff]   ;;  %v774_v51 = vld [vmem:[#allocation3 + $0x16c] ss:$16 sps:$4 sm:$0xff]   ;;  %v549_v4 = vshrl.u32 %v548_v3, 7 }
  0x2c   :  { %v623_v47 = vcombine.high %v53_v46, %v53_v46  ;;  %v772_v50 = vld [vmem:[#allocation3 + $0x164] ss:$16 sps:$4 sm:$0xff]   ;;  %v776_v52 = vld [vmem:[#allocation3 + $0x160] ss:$16 sps:$4 sm:$0xff]   ;;  %v777_v53 = vld [vmem:[#allocation3 + $0x168] ss:$16 sps:$4 sm:$0xff]   ;;  %v622_v2 = vcombine.low %v53_v46, %v53_v46 }
  0x2d   :  { %458 = vmatpush1.bf16.msra.mxu0 %v728_v18  ;;  %499 = vmatpush1.bf16.msra.mxu1 %v729_v19  ;;  %v778_v54 = vld [vmem:[#allocation3 + $0x144] ss:$16 sps:$4 sm:$0xff]   ;;  %v780_v55 = vld [vmem:[#allocation3 + $0x14c] ss:$16 sps:$4 sm:$0xff]   ;;  %v782_v56 = vld [vmem:[#allocation3 + $0x140] ss:$16 sps:$4 sm:$0xff]  }
  0x2e   :  { %459 = vmatprep.subr.bf16.mxu0 %v730_v20  ;;  %500 = vmatprep.subr.bf16.mxu1 %v732_v21  ;;  %v783_v57 = vld [vmem:[#allocation3 + $0x148] ss:$16 sps:$4 sm:$0xff]   ;;  %v784_v58 = vld [vmem:[#allocation3 + $0x124] ss:$16 sps:$4 sm:$0xff]   ;;  %v786_v59 = vld [vmem:[#allocation3 + $0x12c] ss:$16 sps:$4 sm:$0xff]  }
  0x2f   :  { %481 = vmatprep.mubr.bf16.mxu0 %v623_v47  ;;  %522 = vmatprep.mubr.bf16.mxu1 %v623_v47  ;;  %v788_v60 = vld [vmem:[#allocation3 + $0x120] ss:$16 sps:$4 sm:$0xff]   ;;  %v789_v61 = vld [vmem:[#allocation3 + $0x128] ss:$16 sps:$4 sm:$0xff]   ;;  %v790_v62 = vld [vmem:[#allocation3 + $0x104] ss:$16 sps:$4 sm:$0xff]  }
  0x30   :  { %v792_v63 = vld [vmem:[#allocation3 + $0x10c] ss:$16 sps:$4 sm:$0xff]   ;;  %v794_v0 = vld [vmem:[#allocation3 + $0x100] ss:$16 sps:$4 sm:$0xff]   ;;  %v795_v1 = vld [vmem:[#allocation3 + $0x108] ss:$16 sps:$4 sm:$0xff]  }
  0x31   :  { %460 = vmatpush1.bf16.msra.mxu0 %v734_v22  ;;  %501 = vmatpush1.bf16.msra.mxu1 %v735_v23  ;;  %v550_v5 = vsub.s32 0, %v549_v4  ;;  %v558_v6 = vsub.s32 2, %v549_v4  ;;  %v546_v7 = vld [vmem:[#allocation5] sm:$0xf]  ;;  %v554_v8 = vsub.s32 1, %v549_v4  ;;  %v562_v9 = vsub.s32 3, %v549_v4 }
  0x32   :  { %461 = vmatprep.subr.bf16.mxu0 %v736_v24  ;;  %502 = vmatprep.subr.bf16.mxu1 %v738_v25 }
  0x33   :  { %v551_v10 = vrot.slane %v546_v7, %v550_v5  ;;  %v559_v11 = vrot.slane %v546_v7, %v558_v6  ;;  %v555_v14 = vrot.slane %v546_v7, %v554_v8  ;;  %v563_v15 = vrot.slane %v546_v7, %v562_v9 }
  0x35   :  { %462 = vmatpush1.bf16.msra.mxu0 %v740_v26  ;;  %503 = vmatpush1.bf16.msra.mxu1 %v741_v27 }
  0x36   :  { %463 = vmatprep.subr.bf16.mxu0 %v742_v28  ;;  %504 = vmatprep.subr.bf16.mxu1 %v744_v29 }
  0x39   :  { %464 = vmatpush1.bf16.msra.mxu0 %v746_v30  ;;  %505 = vmatpush1.bf16.msra.mxu1 %v747_v31 }
  0x3a   :  { %465 = vmatprep.subr.bf16.mxu0 %v748_v32  ;;  %506 = vmatprep.subr.bf16.mxu1 %v750_v33 }
  0x3d   :  { %466 = vmatpush2.bf16.msra.mxu0 %v752_v34  ;;  %507 = vmatpush2.bf16.msra.mxu1 %v753_v35 }
  0x3e   :  { %467 = vmatprep.subr.bf16.mxu0 %v754_v36  ;;  %508 = vmatprep.subr.bf16.mxu1 %v756_v37 }
  0x41   :  { %468 = vmatpush2.bf16.msra.mxu0 %v758_v38  ;;  %509 = vmatpush2.bf16.msra.mxu1 %v759_v39 }
  0x42   :  { %469 = vmatprep.subr.bf16.mxu0 %v760_v40  ;;  %510 = vmatprep.subr.bf16.mxu1 %v762_v41 }
  0x45   :  { %470 = vmatpush2.bf16.msra.mxu0 %v764_v42  ;;  %511 = vmatpush2.bf16.msra.mxu1 %v765_v43 }
  0x46   :  { %471 = vmatprep.subr.bf16.mxu0 %v766_v44  ;;  %512 = vmatprep.subr.bf16.mxu1 %v768_v45 }
  0x49   :  { %472 = vmatpush2.bf16.msra.mxu0 %v770_v48  ;;  %513 = vmatpush2.bf16.msra.mxu1 %v771_v49 }
  0x4a   :  { %473 = vmatprep.subr.bf16.mxu0 %v772_v50  ;;  %514 = vmatprep.subr.bf16.mxu1 %v774_v51 }
  0x4d   :  { %474 = vmatpush2.bf16.msra.mxu0 %v776_v52  ;;  %515 = vmatpush2.bf16.msra.mxu1 %v777_v53 }
  0x4e   :  { %475 = vmatprep.subr.bf16.mxu0 %v778_v54  ;;  %516 = vmatprep.subr.bf16.mxu1 %v780_v55 }
  0x51   :  { %476 = vmatpush2.bf16.msra.mxu0 %v782_v56  ;;  %517 = vmatpush2.bf16.msra.mxu1 %v783_v57 }
  0x52   :  { %477 = vmatprep.subr.bf16.mxu0 %v784_v58  ;;  %518 = vmatprep.subr.bf16.mxu1 %v786_v59 }
  0x55   :  { %478 = vmatpush2.bf16.msra.mxu0 %v788_v60  ;;  %519 = vmatpush2.bf16.msra.mxu1 %v789_v61 }
  0x56   :  { %479 = vmatprep.subr.bf16.mxu0 %v790_v62  ;;  %520 = vmatprep.subr.bf16.mxu1 %v792_v63 }
  0x59   :  { %480 = vmatpush2.bf16.msra.mxu0 %v794_v0  ;;  %521 = vmatpush2.bf16.msra.mxu1 %v795_v1 }
  0x5c   :  { %482 = vmatmul.mubr.bf16.vlgmr.msra.gmra.mxu0 %v622_v2  ;;  %523 = vmatmul.mubr.bf16.vlgmr.msra.gmra.mxu1 %v622_v2 }
 0x11c   :  { %v483_v12 = vpop.f32.mrf.mxu0  ;;  %v524_v13 = vpop.f32.mrf.mxu1 }
 0x11d   :  { %v568_v16 = vadd.f32 %v551_v10, %v483_v12  ;;  %v570_v17 = vadd.f32 %v559_v11, %v524_v13 }
 0x11e   :  { %v485_v18 = vpop.f32.mrf.mxu0  ;;  %v526_v19 = vpop.f32.mrf.mxu1 }
 0x11f   :  { %v576_v20 = vmin.f32 %v568_v16, 0.0  ;;  %v578_v21 = vmin.f32 %v570_v17, 0.0  ;;  %v569_v22 = vadd.f32 %v555_v14, %v485_v18  ;;  %v571_v23 = vadd.f32 %v563_v15, %v526_v19 }
 0x120   :  { %v487_v24 = vpop.f32.mrf.mxu0  ;;  %v528_v25 = vpop.f32.mrf.mxu1  ;;  %vm572_vm0 = vcmp.gt.f32.partialorder %v568_v16, 0.0  ;;  %vm574_vm2 = vcmp.gt.f32.partialorder %v570_v17, 0.0 }
 0x121   :  { %v580_v26 = vmul.f32 1.442695, %v576_v20  ;;  %v584_v27 = vmul.f32 1.442695, %v578_v21  ;;  %v577_v28 = vmin.f32 %v569_v22, 0.0  ;;  %v579_v29 = vmin.f32 %v571_v23, 0.0 }
 0x122   :  { %v488_v30 = vpop.f32.mrf.mxu0  ;;  %v529_v31 = vpop.f32.mrf.mxu1  ;;  %vm573_vm1 = vcmp.gt.f32.partialorder %v569_v22, 0.0  ;;  %vm575_vm3 = vcmp.gt.f32.partialorder %v571_v23, 0.0 }
 0x123   :  { %798 = vpow2.f32 %v580_v26  ;;  %v582_v32 = vmul.f32 1.442695, %v577_v28  ;;  %v586_v33 = vmul.f32 1.442695, %v579_v29 }
 0x124   :  { %800 = vpow2.f32 %v584_v27 }
 0x125   :  { %802 = vpow2.f32 %v582_v32 }
 0x126   :  { %804 = vpow2.f32 %v586_v33 }
 0x130   :  { %v799_v34 = vpop.eup %798 }
 0x131   :  { %v801_v35 = vpop.eup %800  ;;  %v688_v36 = vadd.f32 -1.0, %v799_v34 }
 0x132   :  { %v803_v37 = vpop.eup %802  ;;  %v690_v38 = vadd.f32 -1.0, %v801_v35 }
 0x133   :  { %v805_v39 = vpop.eup %804  ;;  %v689_v40 = vadd.f32 -1.0, %v803_v37  ;;  %v592_v42 = vsel %vm572_vm0, %v568_v16, %v688_v36 }
 0x134   :  { %v691_v41 = vadd.f32 -1.0, %v805_v39  ;;  %v594_v44 = vsel %vm574_vm2, %v570_v17, %v690_v38 }
 0x135   :  { %v593_v43 = vsel %vm573_vm1, %v569_v22, %v689_v40 }
 0x136   :  { %v694_v45 = vpack.c.bf16 %v593_v43, %v592_v42  ;;  %v595_v46 = vsel %vm575_vm3, %v571_v23, %v691_v41 }
 0x137   :  { %v695_v47 = vpack.c.bf16 %v595_v46, %v594_v44 }
 0x138   :  { %612 = vst [vmem:[%s892_s3] sm:$0xff] %v694_v45 }
 0x139   :  { %613 = vst [vmem:[%s892_s3 + $0x8] sm:$0xff] %v695_v47 }
 0x13a   :  { %618 = vsyncpa [#allocation4], 1 }
 0x13b   :  { %619 = vsyncpa [#allocation6], 1 }

// kernel: deeprl_forward.13
= control target key start
LH: loop header
LB: loop body
LE: loop exit
PB: predicated region body
PF: predicated region fallthrough
CT: control target
= control target key end

     0   :  { %s210_s0 = inlined_call_operand.vmem [shape: f32[64,128], index: 0, kind: input, shape index: {}]   ;;  %s211_s1 = inlined_call_operand.hbm [shape: f32[64,128], index: 1, kind: output, shape index: {}]  }
   0x1   :  { %v9_v0 = vld [vmem:[%s210_s0] sm:$0xff]  ;;  %v11_v1 = vld [vmem:[%s210_s0 + $0x10] sm:$0xff]  ;;  %v10_v2 = vld [vmem:[%s210_s0 + $0x8] sm:$0xff] }
   0x2   :  { %17 = vmax.xlane.f32.xlu0 %v9_v0  ;;  %21 = vmax.xlane.f32.xlu1 %v11_v1  ;;  %v12_v3 = vld [vmem:[%s210_s0 + $0x18] sm:$0xff] }
   0x3   :  { %6 = vsyncpa [#allocation3], 0  ;;  %v13_v4 = vld [vmem:[%s210_s0 + $0x20] sm:$0xff]  ;;  %v14_v5 = vld [vmem:[%s210_s0 + $0x28] sm:$0xff] }
   0x4   :  { %v15_v6 = vld [vmem:[%s210_s0 + $0x30] sm:$0xff]  ;;  %v16_v7 = vld [vmem:[%s210_s0 + $0x38] sm:$0xff]  ;;  %s170_s0 = smov [#allocation2]  }
   0x5   :  { %s102_s22 = sshll.u32 %s170_s0, 4  ;;  %s103_s22 = int_to_ptr.vmem [resolvable:$true] %s102_s22 }
   0x6   :  { %19 = vmax.xlane.f32.xlu0 %v10_v2  ;;  %23 = vmax.xlane.f32.xlu1 %v12_v3  ;;  %s148_s23 = scalar_lea.vmem %s103_s22, 1024  ;;  %p153_p1 = scmp.lt.s32.totalorder %s103_s22, %s103_s22 }
   0x7   :  { %p149_p0 = scmp.ne.s32.totalorder %s103_s22, %s148_s23  ;;  %p154_p2 = scmp.lt.s32.totalorder %s148_s23, %s148_s23 }
   0x9   :  { %p155_p3 = por %p154_p2, %p153_p1 }
   0xa   :  { %25 = vmax.xlane.f32.xlu0 %v13_v4  ;;  %27 = vmax.xlane.f32.xlu1 %v14_v5 }
   0xb   :  { %p156_p4 = pnand %p155_p3, %p149_p0 }
   0xe   :  { %29 = vmax.xlane.f32.xlu0 %v15_v6  ;;  %31 = vmax.xlane.f32.xlu1 %v16_v7 }
  0x8b   :  { %v18_v8 = vpop.xlane.xlu0 %17  ;;  %v22_v9 = vpop.xlane.xlu1 %21 }
  0x8c   :  { %v33_v10 = vsub.f32 %v9_v0, %v18_v8  ;;  %v35_v11 = vsub.f32 %v11_v1, %v22_v9 }
  0x8e   :  { %v41_v12 = vmul.f32 1.442695, %v33_v10  ;;  %v45_v13 = vmul.f32 1.442695, %v35_v11 }
  0x8f   :  { %v20_v14 = vpop.xlane.xlu0 %19  ;;  %v24_v15 = vpop.xlane.xlu1 %23 }
  0x90   :  { %116 = vpow2.f32 %v41_v12  ;;  %v34_v16 = vsub.f32 %v10_v2, %v20_v14  ;;  %v36_v17 = vsub.f32 %v12_v3, %v24_v15 }
  0x91   :  { %118 = vpow2.f32 %v45_v13 }
  0x92   :  { %v43_v18 = vmul.f32 1.442695, %v34_v16  ;;  %v47_v19 = vmul.f32 1.442695, %v36_v17 }
  0x93   :  { %v26_v20 = vpop.xlane.xlu0 %25  ;;  %v28_v21 = vpop.xlane.xlu1 %27 }
  0x94   :  { %120 = vpow2.f32 %v43_v18  ;;  %v37_v22 = vsub.f32 %v13_v4, %v26_v20  ;;  %v38_v23 = vsub.f32 %v14_v5, %v28_v21 }
  0x95   :  { %122 = vpow2.f32 %v47_v19 }
  0x96   :  { %v49_v24 = vmul.f32 1.442695, %v37_v22  ;;  %v51_v25 = vmul.f32 1.442695, %v38_v23 }
  0x97   :  { %v30_v26 = vpop.xlane.xlu0 %29  ;;  %v32_v27 = vpop.xlane.xlu1 %31 }
  0x98   :  { %124 = vpow2.f32 %v49_v24  ;;  %v39_v28 = vsub.f32 %v15_v6, %v30_v26  ;;  %v40_v29 = vsub.f32 %v16_v7, %v32_v27 }
  0x99   :  { %126 = vpow2.f32 %v51_v25 }
  0x9a   :  { %v53_v30 = vmul.f32 1.442695, %v39_v28  ;;  %v55_v31 = vmul.f32 1.442695, %v40_v29 }
  0x9c   :  { %128 = vpow2.f32 %v53_v30 }
  0x9d   :  { %v117_v32 = vpop.eup %116  ;;  %130 = vpow2.f32 %v55_v31 }
  0x9e   :  { %57 = vadd.xlane.f32.xlu0 %v117_v32  ;;  %v119_v33 = vpop.eup %118 }
  0xa1   :  { %v121_v34 = vpop.eup %120 }
  0xa2   :  { %61 = vadd.xlane.f32.xlu0 %v119_v33  ;;  %59 = vadd.xlane.f32.xlu1 %v121_v34  ;;  %v123_v35 = vpop.eup %122 }
  0xa5   :  { %v125_v36 = vpop.eup %124 }
  0xa6   :  { %63 = vadd.xlane.f32.xlu1 %v123_v35  ;;  %65 = vadd.xlane.f32.xlu0 %v125_v36  ;;  %v127_v37 = vpop.eup %126 }
  0xa9   :  { %v129_v38 = vpop.eup %128 }
  0xaa   :  { %67 = vadd.xlane.f32.xlu1 %v127_v37  ;;  %69 = vadd.xlane.f32.xlu0 %v129_v38  ;;  %v131_v39 = vpop.eup %130 }
  0xae   :  { %71 = vadd.xlane.f32.xlu1 %v131_v39 }
 0x127   :  { %v58_v40 = vpop.xlane.xlu0 %57 }
 0x128   :  { %132 = vrcp.f32 %v58_v40 }
 0x12b   :  { %v60_v41 = vpop.xlane.xlu1 %59  ;;  %v62_v42 = vpop.xlane.xlu0 %61 }
 0x12c   :  { %134 = vrcp.f32 %v60_v41 }
 0x12d   :  { %136 = vrcp.f32 %v62_v42 }
 0x12f   :  { %v64_v43 = vpop.xlane.xlu1 %63  ;;  %v66_v44 = vpop.xlane.xlu0 %65 }
 0x130   :  { %138 = vrcp.f32 %v64_v43 }
 0x131   :  { %140 = vrcp.f32 %v66_v44 }
 0x133   :  { %v68_v45 = vpop.xlane.xlu1 %67  ;;  %v70_v46 = vpop.xlane.xlu0 %69 }
 0x134   :  { %142 = vrcp.f32 %v68_v45 }
 0x135   :  { %v133_v47 = vpop.eup %132  ;;  %144 = vrcp.f32 %v70_v46 }
 0x136   :  { %v74_v48 = vmul.f32 %v133_v47, %v117_v32 }
 0x137   :  { %v72_v49 = vpop.xlane.xlu1 %71 }
 0x138   :  { %89 = vst [vmem:[#allocation2] sm:$0xff] %v74_v48  ;;  %146 = vrcp.f32 %v72_v49 }
 0x139   :  { %v135_v50 = vpop.eup %134 }
 0x13a   :  { %v137_v51 = vpop.eup %136  ;;  %v76_v52 = vmul.f32 %v135_v50, %v121_v34 }
 0x13b   :  { %v78_v53 = vmul.f32 %v137_v51, %v119_v33 }
 0x13c   :  { %90 = vst [vmem:[#allocation2 + $0x8] sm:$0xff] %v76_v52 }
 0x13d   :  { %v139_v54 = vpop.eup %138  ;;  %91 = vst [vmem:[#allocation2 + $0x10] sm:$0xff] %v78_v53 }
 0x13e   :  { %v141_v55 = vpop.eup %140  ;;  %v80_v56 = vmul.f32 %v139_v54, %v123_v35 }
 0x13f   :  { %v82_v57 = vmul.f32 %v141_v55, %v125_v36 }
 0x140   :  { %92 = vst [vmem:[#allocation2 + $0x18] sm:$0xff] %v80_v56 }
 0x141   :  { %v143_v58 = vpop.eup %142  ;;  %93 = vst [vmem:[#allocation2 + $0x20] sm:$0xff] %v82_v57 }
 0x142   :  { %v145_v59 = vpop.eup %144  ;;  %v84_v60 = vmul.f32 %v143_v58, %v127_v37 }
 0x143   :  { %v86_v61 = vmul.f32 %v145_v59, %v129_v38 }
 0x144   :  { %94 = vst [vmem:[#allocation2 + $0x28] sm:$0xff] %v84_v60 }
 0x145   :  { %v147_v62 = vpop.eup %146  ;;  %95 = vst [vmem:[#allocation2 + $0x30] sm:$0xff] %v86_v61 }
 0x146   :  { %v88_v63 = vmul.f32 %v147_v62, %v131_v39 }
 0x148   :  { %96 = vst [vmem:[#allocation2 + $0x38] sm:$0xff] %v88_v63 }
 0x149   :  { %159 = shalt.err (!%p156_p4)
}
 0x14a   :  { %s171_s24 = smov 128   ;;  %s172_s25 = smov 8  }
 0x14b   :  { %108 = dma.vmem_to_hbm [thread:$0]  %s103_s22, 1024, %s211_s1, [#allocation3], %s171_s24, %s171_s24, %s172_s25  }
 0x14c   :  { %168 = dma.done.wait [#allocation3], 1024  }
 0x14d   :  { %169 = vsyncadd [#allocation3], 4294966272 }
 0x14e   :  { %112 = vsyncpa [#allocation3], 1 }

// kernel: deeprl_forward.12
= control target key start
LH: loop header
LB: loop body
LE: loop exit
PB: predicated region body
PF: predicated region fallthrough
CT: control target
= control target key end

     0   :  { %s1736_s1 = inlined_call_operand.vmem [shape: bf16[1,1,256,1024], index: 1, kind: input, shape index: {}]   ;;  %s1737_s0 = inlined_call_operand.vmem [shape: bf16[8,256], index: 0, kind: input, shape index: {}]   ;;  %s1738_s2 = inlined_call_operand.vmem [shape: f32[1,1024], index: 2, kind: input, shape index: {}]   ;;  %s1739_s3 = inlined_call_operand.vmem [shape: f32[8,1024], index: 3, kind: output, shape index: {}]  }
   0x1   :  { %v96_v0 = vld [vmem:[%s1736_s1 + $0x1c0] sm:$0xff]  ;;  %v97_v2 = vld [vmem:[%s1736_s1 + $0x1c8] sm:$0xff] }
   0x2   :  { %v100_v1 = vld [vmem:[%s1736_s1 + $0x1e0] sm:$0xff]  ;;  %v101_v4 = vld [vmem:[%s1736_s1 + $0x1e8] sm:$0xff] }
   0x3   :  { %v1177_v3 = vcombine.high %v96_v0, %v100_v1  ;;  %v1176_v5 = vcombine.low %v96_v0, %v100_v1  ;;  %v88_v6 = vld [vmem:[%s1736_s1 + $0x180] sm:$0xff]  ;;  %v1179_v8 = vcombine.high %v97_v2, %v101_v4  ;;  %v1178_v9 = vcombine.low %v97_v2, %v101_v4  ;;  %v89_v11 = vld [vmem:[%s1736_s1 + $0x188] sm:$0xff] }
   0x4   :  { %v92_v7 = vld [vmem:[%s1736_s1 + $0x1a0] sm:$0xff]  ;;  %v93_v12 = vld [vmem:[%s1736_s1 + $0x1a8] sm:$0xff] }
   0x5   :  { %v1169_v10 = vcombine.high %v88_v6, %v92_v7  ;;  %v80_v13 = vld [vmem:[%s1736_s1 + $0x140] sm:$0xff]  ;;  %815 = vmatprep.subr.bf16.mxu0 %v1177_v3  ;;  %v1171_v14 = vcombine.high %v89_v11, %v93_v12  ;;  %v81_v16 = vld [vmem:[%s1736_s1 + $0x148] sm:$0xff]  ;;  %856 = vmatprep.subr.bf16.mxu1 %v1179_v8  ;;  %v1168_v18 = vcombine.low %v88_v6, %v92_v7 }
   0x6   :  { %v84_v15 = vld [vmem:[%s1736_s1 + $0x160] sm:$0xff]  ;;  %v85_v17 = vld [vmem:[%s1736_s1 + $0x168] sm:$0xff]  ;;  %816 = vmatpush1.bf16.msra.mxu0 %v1176_v5  ;;  %857 = vmatpush1.bf16.msra.mxu1 %v1178_v9  ;;  %v1170_v19 = vcombine.low %v89_v11, %v93_v12 }
   0x7   :  { %817 = vmatprep.subr.bf16.mxu0 %v1169_v10  ;;  %v1161_v20 = vcombine.high %v80_v13, %v84_v15  ;;  %858 = vmatprep.subr.bf16.mxu1 %v1171_v14  ;;  %v1163_v21 = vcombine.high %v81_v16, %v85_v17  ;;  %v72_v22 = vld [vmem:[%s1736_s1 + $0x100] sm:$0xff]  ;;  %v73_v24 = vld [vmem:[%s1736_s1 + $0x108] sm:$0xff]  ;;  %v1160_v26 = vcombine.low %v80_v13, %v84_v15 }
   0x8   :  { %v76_v23 = vld [vmem:[%s1736_s1 + $0x120] sm:$0xff]  ;;  %v77_v25 = vld [vmem:[%s1736_s1 + $0x128] sm:$0xff]  ;;  %v1162_v27 = vcombine.low %v81_v16, %v85_v17 }
   0x9   :  { %v1153_v28 = vcombine.high %v72_v22, %v76_v23  ;;  %v1155_v29 = vcombine.high %v73_v24, %v77_v25  ;;  %v64_v30 = vld [vmem:[%s1736_s1 + $0xc0] sm:$0xff]  ;;  %v65_v32 = vld [vmem:[%s1736_s1 + $0xc8] sm:$0xff]  ;;  %v1152_v34 = vcombine.low %v72_v22, %v76_v23  ;;  %v1154_v35 = vcombine.low %v73_v24, %v77_v25 }
   0xa   :  { %818 = vmatpush1.bf16.msra.mxu0 %v1168_v18  ;;  %859 = vmatpush1.bf16.msra.mxu1 %v1170_v19  ;;  %v68_v31 = vld [vmem:[%s1736_s1 + $0xe0] sm:$0xff]  ;;  %v69_v33 = vld [vmem:[%s1736_s1 + $0xe8] sm:$0xff] }
   0xb   :  { %819 = vmatprep.subr.bf16.mxu0 %v1161_v20  ;;  %860 = vmatprep.subr.bf16.mxu1 %v1163_v21  ;;  %v1145_v36 = vcombine.high %v64_v30, %v68_v31  ;;  %v1147_v37 = vcombine.high %v65_v32, %v69_v33  ;;  %v56_v38 = vld [vmem:[%s1736_s1 + $0x80] sm:$0xff]  ;;  %v57_v40 = vld [vmem:[%s1736_s1 + $0x88] sm:$0xff]  ;;  %v1144_v42 = vcombine.low %v64_v30, %v68_v31 }
   0xc   :  { %v60_v39 = vld [vmem:[%s1736_s1 + $0xa0] sm:$0xff]  ;;  %v61_v41 = vld [vmem:[%s1736_s1 + $0xa8] sm:$0xff]  ;;  %v1146_v43 = vcombine.low %v65_v32, %v69_v33 }
   0xd   :  { %v1137_v44 = vcombine.high %v56_v38, %v60_v39  ;;  %v1139_v45 = vcombine.high %v57_v40, %v61_v41  ;;  %v48_v46 = vld [vmem:[%s1736_s1 + $0x40] sm:$0xff]  ;;  %v49_v48 = vld [vmem:[%s1736_s1 + $0x48] sm:$0xff]  ;;  %v1136_v50 = vcombine.low %v56_v38, %v60_v39  ;;  %v1138_v51 = vcombine.low %v57_v40, %v61_v41 }
   0xe   :  { %820 = vmatpush1.bf16.msra.mxu0 %v1160_v26  ;;  %861 = vmatpush1.bf16.msra.mxu1 %v1162_v27  ;;  %v52_v47 = vld [vmem:[%s1736_s1 + $0x60] sm:$0xff]  ;;  %v53_v49 = vld [vmem:[%s1736_s1 + $0x68] sm:$0xff] }
   0xf   :  { %821 = vmatprep.subr.bf16.mxu0 %v1153_v28  ;;  %862 = vmatprep.subr.bf16.mxu1 %v1155_v29  ;;  %v1129_v52 = vcombine.high %v48_v46, %v52_v47  ;;  %v1381_v53 = vld [vmem:[%s1737_s0] sm:$0xff]  ;;  %v1131_v54 = vcombine.high %v49_v48, %v53_v49  ;;  %v41_v58 = vld [vmem:[%s1736_s1 + $0x8] sm:$0xff]  ;;  %v1128_v60 = vcombine.low %v48_v46, %v52_v47 }
  0x10   :  { %v40_v55 = vld [vmem:[%s1736_s1] sm:$0xff]  ;;  %v1391_v57 = vcombine.high %v1381_v53, %v1381_v53  ;;  %v45_v59 = vld [vmem:[%s1736_s1 + $0x28] sm:$0xff]  ;;  %v1130_v61 = vcombine.low %v49_v48, %v53_v49 }
  0x11   :  { %v44_v56 = vld [vmem:[%s1736_s1 + $0x20] sm:$0xff]  ;;  %v1123_v63 = vcombine.high %v41_v58, %v45_v59  ;;  %v161_v2 = vld [vmem:[%s1736_s1 + $0x3c8] sm:$0xff]  ;;  %v1122_v5 = vcombine.low %v41_v58, %v45_v59 }
  0x12   :  { %822 = vmatpush1.bf16.msra.mxu0 %v1152_v34  ;;  %863 = vmatpush1.bf16.msra.mxu1 %v1154_v35  ;;  %v1121_v62 = vcombine.high %v40_v55, %v44_v56  ;;  %v160_v0 = vld [vmem:[%s1736_s1 + $0x3c0] sm:$0xff]  ;;  %v165_v3 = vld [vmem:[%s1736_s1 + $0x3e8] sm:$0xff]  ;;  %v1120_v4 = vcombine.low %v40_v55, %v44_v56 }
  0x13   :  { %823 = vmatprep.subr.bf16.mxu0 %v1145_v36  ;;  %864 = vmatprep.subr.bf16.mxu1 %v1147_v37  ;;  %v164_v1 = vld [vmem:[%s1736_s1 + $0x3e0] sm:$0xff]  ;;  %v1243_v7 = vcombine.high %v161_v2, %v165_v3  ;;  %v153_v10 = vld [vmem:[%s1736_s1 + $0x388] sm:$0xff]  ;;  %v1242_v13 = vcombine.low %v161_v2, %v165_v3  ;;  %v98_v2 = vld [vmem:[%s1736_s1 + $0x1d0] sm:$0xff] }
  0x14   :  { %847 = vmatprep.mubr.bf16.mxu0 %v1391_v57  ;;  %888 = vmatprep.mubr.bf16.mxu1 %v1391_v57  ;;  %v1241_v6 = vcombine.high %v160_v0, %v164_v1  ;;  %v152_v8 = vld [vmem:[%s1736_s1 + $0x380] sm:$0xff]  ;;  %v157_v11 = vld [vmem:[%s1736_s1 + $0x3a8] sm:$0xff]  ;;  %v1240_v12 = vcombine.low %v160_v0, %v164_v1  ;;  %v102_v3 = vld [vmem:[%s1736_s1 + $0x1f0] sm:$0xff] }
  0x15   :  { %v156_v9 = vld [vmem:[%s1736_s1 + $0x3a0] sm:$0xff]  ;;  %v1235_v15 = vcombine.high %v153_v10, %v157_v11  ;;  %v145_v18 = vld [vmem:[%s1736_s1 + $0x348] sm:$0xff]  ;;  %v1234_v21 = vcombine.low %v153_v10, %v157_v11  ;;  %v90_v10 = vld [vmem:[%s1736_s1 + $0x190] sm:$0xff] }
  0x16   :  { %824 = vmatpush1.bf16.msra.mxu0 %v1144_v42  ;;  %865 = vmatpush1.bf16.msra.mxu1 %v1146_v43  ;;  %v1233_v14 = vcombine.high %v152_v8, %v156_v9  ;;  %v144_v16 = vld [vmem:[%s1736_s1 + $0x340] sm:$0xff]  ;;  %v149_v19 = vld [vmem:[%s1736_s1 + $0x368] sm:$0xff]  ;;  %v1232_v20 = vcombine.low %v152_v8, %v156_v9  ;;  %v1181_v8 = vcombine.high %v98_v2, %v102_v3  ;;  %v94_v11 = vld [vmem:[%s1736_s1 + $0x1b0] sm:$0xff] }
  0x17   :  { %825 = vmatprep.subr.bf16.mxu0 %v1137_v44  ;;  %866 = vmatprep.subr.bf16.mxu1 %v1139_v45  ;;  %v148_v17 = vld [vmem:[%s1736_s1 + $0x360] sm:$0xff]  ;;  %v1227_v23 = vcombine.high %v145_v18, %v149_v19  ;;  %v137_v26 = vld [vmem:[%s1736_s1 + $0x308] sm:$0xff]  ;;  %v1226_v29 = vcombine.low %v145_v18, %v149_v19  ;;  %v86_v19 = vld [vmem:[%s1736_s1 + $0x170] sm:$0xff] }
  0x18   :  { %v1225_v22 = vcombine.high %v144_v16, %v148_v17  ;;  %v136_v24 = vld [vmem:[%s1736_s1 + $0x300] sm:$0xff]  ;;  %v141_v27 = vld [vmem:[%s1736_s1 + $0x328] sm:$0xff]  ;;  %v1224_v28 = vcombine.low %v144_v16, %v148_v17  ;;  %v1173_v17 = vcombine.high %v90_v10, %v94_v11 }
  0x19   :  { %v140_v25 = vld [vmem:[%s1736_s1 + $0x320] sm:$0xff]  ;;  %v1219_v31 = vcombine.high %v137_v26, %v141_v27  ;;  %v129_v34 = vld [vmem:[%s1736_s1 + $0x2c8] sm:$0xff]  ;;  %v1218_v37 = vcombine.low %v137_v26, %v141_v27  ;;  %v74_v26 = vld [vmem:[%s1736_s1 + $0x110] sm:$0xff] }
  0x1a   :  { %826 = vmatpush1.bf16.msra.mxu0 %v1136_v50  ;;  %867 = vmatpush1.bf16.msra.mxu1 %v1138_v51  ;;  %v1217_v30 = vcombine.high %v136_v24, %v140_v25  ;;  %v128_v32 = vld [vmem:[%s1736_s1 + $0x2c0] sm:$0xff]  ;;  %v133_v35 = vld [vmem:[%s1736_s1 + $0x2e8] sm:$0xff]  ;;  %v1216_v36 = vcombine.low %v136_v24, %v140_v25  ;;  %v78_v27 = vld [vmem:[%s1736_s1 + $0x130] sm:$0xff] }
  0x1b   :  { %827 = vmatprep.subr.bf16.mxu0 %v1129_v52  ;;  %868 = vmatprep.subr.bf16.mxu1 %v1131_v54  ;;  %v132_v33 = vld [vmem:[%s1736_s1 + $0x2e0] sm:$0xff]  ;;  %v1211_v39 = vcombine.high %v129_v34, %v133_v35  ;;  %v121_v42 = vld [vmem:[%s1736_s1 + $0x288] sm:$0xff]  ;;  %v1210_v45 = vcombine.low %v129_v34, %v133_v35  ;;  %v66_v34 = vld [vmem:[%s1736_s1 + $0xd0] sm:$0xff] }
  0x1c   :  { %v1209_v38 = vcombine.high %v128_v32, %v132_v33  ;;  %v120_v40 = vld [vmem:[%s1736_s1 + $0x280] sm:$0xff]  ;;  %v125_v43 = vld [vmem:[%s1736_s1 + $0x2a8] sm:$0xff]  ;;  %v1208_v44 = vcombine.low %v128_v32, %v132_v33  ;;  %v1157_v32 = vcombine.high %v74_v26, %v78_v27  ;;  %v70_v35 = vld [vmem:[%s1736_s1 + $0xf0] sm:$0xff] }
  0x1d   :  { %v124_v41 = vld [vmem:[%s1736_s1 + $0x2a0] sm:$0xff]  ;;  %v1203_v47 = vcombine.high %v121_v42, %v125_v43  ;;  %v113_v50 = vld [vmem:[%s1736_s1 + $0x248] sm:$0xff]  ;;  %v1202_v54 = vcombine.low %v121_v42, %v125_v43  ;;  %v62_v42 = vld [vmem:[%s1736_s1 + $0xb0] sm:$0xff] }
  0x1e   :  { %828 = vmatpush1.bf16.msra.mxu0 %v1128_v60  ;;  %869 = vmatpush1.bf16.msra.mxu1 %v1130_v61  ;;  %v1201_v46 = vcombine.high %v120_v40, %v124_v41  ;;  %v112_v48 = vld [vmem:[%s1736_s1 + $0x240] sm:$0xff]  ;;  %v117_v51 = vld [vmem:[%s1736_s1 + $0x268] sm:$0xff]  ;;  %v1200_v52 = vcombine.low %v120_v40, %v124_v41  ;;  %v58_v41 = vld [vmem:[%s1736_s1 + $0x90] sm:$0xff] }
  0x1f   :  { %829 = vmatprep.subr.bf16.mxu0 %v1121_v62  ;;  %870 = vmatprep.subr.bf16.mxu1 %v1123_v63  ;;  %v116_v49 = vld [vmem:[%s1736_s1 + $0x260] sm:$0xff]  ;;  %v1195_v56 = vcombine.high %v113_v50, %v117_v51  ;;  %v105_v60 = vld [vmem:[%s1736_s1 + $0x208] sm:$0xff]  ;;  %v1194_v63 = vcombine.low %v113_v50, %v117_v51  ;;  %v59_v43 = vld [vmem:[%s1736_s1 + $0x98] sm:$0xff] }
  0x20   :  { %v1193_v55 = vcombine.high %v112_v48, %v116_v49  ;;  %v104_v58 = vld [vmem:[%s1736_s1 + $0x200] sm:$0xff]  ;;  %v109_v61 = vld [vmem:[%s1736_s1 + $0x228] sm:$0xff]  ;;  %v1192_v62 = vcombine.low %v112_v48, %v116_v49  ;;  %v50_v49 = vld [vmem:[%s1736_s1 + $0x50] sm:$0xff] }
  0x21   :  { %v108_v59 = vld [vmem:[%s1736_s1 + $0x220] sm:$0xff]  ;;  %v1187_v1 = vcombine.high %v105_v60, %v109_v61  ;;  %v54_v50 = vld [vmem:[%s1736_s1 + $0x70] sm:$0xff]  ;;  %v51_v51 = vld [vmem:[%s1736_s1 + $0x58] sm:$0xff] }
  0x22   :  { %830 = vmatpush1.bf16.msra.mxu0 %v1120_v4  ;;  %871 = vmatpush1.bf16.msra.mxu1 %v1122_v5  ;;  %v1185_v0 = vcombine.high %v104_v58, %v108_v59  ;;  %v99_v4 = vld [vmem:[%s1736_s1 + $0x1d8] sm:$0xff] }
  0x23   :  { %831 = vmatprep.subr.bf16.mxu0 %v1241_v6  ;;  %872 = vmatprep.subr.bf16.mxu1 %v1243_v7  ;;  %v103_v5 = vld [vmem:[%s1736_s1 + $0x1f8] sm:$0xff]  ;;  %v1184_v6 = vcombine.low %v104_v58, %v108_v59  ;;  %v1186_v7 = vcombine.low %v105_v60, %v109_v61  ;;  %v42_v59 = vld [vmem:[%s1736_s1 + $0x10] sm:$0xff] }
  0x24   :  { %v1183_v9 = vcombine.high %v99_v4, %v103_v5  ;;  %v1182_v16 = vcombine.low %v99_v4, %v103_v5  ;;  %v46_v60 = vld [vmem:[%s1736_s1 + $0x30] sm:$0xff]  ;;  %v43_v61 = vld [vmem:[%s1736_s1 + $0x18] sm:$0xff] }
  0x25   :  { %v166_v4 = vld [vmem:[%s1736_s1 + $0x3f0] sm:$0xff]  ;;  %v163_v5 = vld [vmem:[%s1736_s1 + $0x3d8] sm:$0xff] }
  0x26   :  { %832 = vmatpush2.bf16.msra.mxu0 %v1240_v12  ;;  %873 = vmatpush2.bf16.msra.mxu1 %v1242_v13  ;;  %v1517_v12 = vcombine.low %v1381_v53, %v1381_v53  ;;  %v91_v13 = vld [vmem:[%s1736_s1 + $0x198] sm:$0xff]  ;;  %v82_v53 = vld [vmem:[%s1736_s1 + $0x150] sm:$0xff] }
  0x27   :  { %833 = vmatprep.subr.bf16.mxu0 %v1233_v14  ;;  %874 = vmatprep.subr.bf16.mxu1 %v1235_v15  ;;  %v95_v14 = vld [vmem:[%s1736_s1 + $0x1b8] sm:$0xff]  ;;  %v1180_v15 = vcombine.low %v98_v2, %v102_v3  ;;  %v1165_v24 = vcombine.high %v82_v53, %v86_v19  ;;  %v162_v3 = vld [vmem:[%s1736_s1 + $0x3d0] sm:$0xff] }
  0x28   :  { %v1175_v18 = vcombine.high %v91_v13, %v95_v14 }
  0x2a   :  { %834 = vmatpush2.bf16.msra.mxu0 %v1232_v20  ;;  %875 = vmatpush2.bf16.msra.mxu1 %v1234_v21  ;;  %v83_v20 = vld [vmem:[%s1736_s1 + $0x158] sm:$0xff] }
  0x2b   :  { %835 = vmatprep.subr.bf16.mxu0 %v1225_v22  ;;  %876 = vmatprep.subr.bf16.mxu1 %v1227_v23  ;;  %v87_v21 = vld [vmem:[%s1736_s1 + $0x178] sm:$0xff]  ;;  %v1172_v22 = vcombine.low %v90_v10, %v94_v11  ;;  %v1174_v23 = vcombine.low %v91_v13, %v95_v14  ;;  %v154_v11 = vld [vmem:[%s1736_s1 + $0x390] sm:$0xff] }
  0x2c   :  { %v1167_v25 = vcombine.high %v83_v20, %v87_v21  ;;  %v158_v13 = vld [vmem:[%s1736_s1 + $0x3b0] sm:$0xff]  ;;  %v155_v14 = vld [vmem:[%s1736_s1 + $0x398] sm:$0xff] }
  0x2e   :  { %836 = vmatpush2.bf16.msra.mxu0 %v1224_v28  ;;  %877 = vmatpush2.bf16.msra.mxu1 %v1226_v29  ;;  %v75_v28 = vld [vmem:[%s1736_s1 + $0x118] sm:$0xff] }
  0x2f   :  { %837 = vmatprep.subr.bf16.mxu0 %v1217_v30  ;;  %878 = vmatprep.subr.bf16.mxu1 %v1219_v31  ;;  %v79_v29 = vld [vmem:[%s1736_s1 + $0x138] sm:$0xff]  ;;  %v1164_v30 = vcombine.low %v82_v53, %v86_v19  ;;  %v1166_v31 = vcombine.low %v83_v20, %v87_v21  ;;  %v146_v19 = vld [vmem:[%s1736_s1 + $0x350] sm:$0xff] }
  0x30   :  { %v1159_v33 = vcombine.high %v75_v28, %v79_v29  ;;  %v150_v20 = vld [vmem:[%s1736_s1 + $0x370] sm:$0xff]  ;;  %v147_v21 = vld [vmem:[%s1736_s1 + $0x358] sm:$0xff] }
  0x32   :  { %838 = vmatpush2.bf16.msra.mxu0 %v1216_v36  ;;  %879 = vmatpush2.bf16.msra.mxu1 %v1218_v37  ;;  %v71_v36 = vld [vmem:[%s1736_s1 + $0xf8] sm:$0xff]  ;;  %v1156_v37 = vcombine.low %v74_v26, %v78_v27  ;;  %v138_v27 = vld [vmem:[%s1736_s1 + $0x310] sm:$0xff] }
  0x33   :  { %839 = vmatprep.subr.bf16.mxu0 %v1209_v38  ;;  %880 = vmatprep.subr.bf16.mxu1 %v1211_v39  ;;  %v1158_v38 = vcombine.low %v75_v28, %v79_v29  ;;  %v1149_v39 = vcombine.high %v66_v34, %v70_v35  ;;  %v142_v28 = vld [vmem:[%s1736_s1 + $0x330] sm:$0xff]  ;;  %v139_v29 = vld [vmem:[%s1736_s1 + $0x318] sm:$0xff] }
  0x36   :  { %840 = vmatpush2.bf16.msra.mxu0 %v1208_v44  ;;  %881 = vmatpush2.bf16.msra.mxu1 %v1210_v45  ;;  %v63_v44 = vld [vmem:[%s1736_s1 + $0xb8] sm:$0xff]  ;;  %v1148_v45 = vcombine.low %v66_v34, %v70_v35  ;;  %v130_v35 = vld [vmem:[%s1736_s1 + $0x2d0] sm:$0xff] }
  0x37   :  { %841 = vmatprep.subr.bf16.mxu0 %v1201_v46  ;;  %882 = vmatprep.subr.bf16.mxu1 %v1203_v47  ;;  %v1141_v47 = vcombine.high %v58_v41, %v62_v42  ;;  %v1143_v48 = vcombine.high %v59_v43, %v63_v44 }
  0x3a   :  { %842 = vmatpush2.bf16.msra.mxu0 %v1200_v52  ;;  %883 = vmatpush2.bf16.msra.mxu1 %v1202_v54  ;;  %v55_v52 = vld [vmem:[%s1736_s1 + $0x78] sm:$0xff]  ;;  %v1140_v54 = vcombine.low %v58_v41, %v62_v42  ;;  %v122_v42 = vld [vmem:[%s1736_s1 + $0x290] sm:$0xff] }
  0x3b   :  { %843 = vmatprep.subr.bf16.mxu0 %v1193_v55  ;;  %884 = vmatprep.subr.bf16.mxu1 %v1195_v56  ;;  %v1142_v55 = vcombine.low %v59_v43, %v63_v44  ;;  %v1133_v56 = vcombine.high %v50_v49, %v54_v50  ;;  %v1135_v58 = vcombine.high %v51_v51, %v55_v52  ;;  %v126_v43 = vld [vmem:[%s1736_s1 + $0x2b0] sm:$0xff]  ;;  %v123_v44 = vld [vmem:[%s1736_s1 + $0x298] sm:$0xff] }
  0x3e   :  { %844 = vmatpush2.bf16.msra.mxu0 %v1192_v62  ;;  %885 = vmatpush2.bf16.msra.mxu1 %v1194_v63  ;;  %v47_v62 = vld [vmem:[%s1736_s1 + $0x38] sm:$0xff]  ;;  %v1132_v63 = vcombine.low %v50_v49, %v54_v50  ;;  %v114_v50 = vld [vmem:[%s1736_s1 + $0x250] sm:$0xff] }
  0x3f   :  { %845 = vmatprep.subr.bf16.mxu0 %v1185_v0  ;;  %886 = vmatprep.subr.bf16.mxu1 %v1187_v1  ;;  %v1134_v0 = vcombine.low %v51_v51, %v55_v52  ;;  %v1125_v1 = vcombine.high %v42_v59, %v46_v60  ;;  %v1127_v2 = vcombine.high %v43_v61, %v47_v62  ;;  %v118_v51 = vld [vmem:[%s1736_s1 + $0x270] sm:$0xff]  ;;  %v115_v52 = vld [vmem:[%s1736_s1 + $0x258] sm:$0xff] }
  0x42   :  { %846 = vmatpush2.bf16.msra.mxu0 %v1184_v6  ;;  %887 = vmatpush2.bf16.msra.mxu1 %v1186_v7  ;;  %v167_v6 = vld [vmem:[%s1736_s1 + $0x3f8] sm:$0xff]  ;;  %v1124_v7 = vcombine.low %v42_v59, %v46_v60  ;;  %v106_v60 = vld [vmem:[%s1736_s1 + $0x210] sm:$0xff] }
  0x43   :  { %897 = vmatprep.subr.bf16.mxu0 %v1181_v8  ;;  %938 = vmatprep.subr.bf16.mxu1 %v1183_v9  ;;  %v1126_v8 = vcombine.low %v43_v61, %v47_v62  ;;  %v1245_v9 = vcombine.high %v162_v3, %v166_v4  ;;  %v1247_v10 = vcombine.high %v163_v5, %v167_v6  ;;  %v110_v61 = vld [vmem:[%s1736_s1 + $0x230] sm:$0xff]  ;;  %v107_v62 = vld [vmem:[%s1736_s1 + $0x218] sm:$0xff] }
  0x45   :  { %848 = vmatmul.mubr.bf16.vlgmr.msra.gmra.mxu0 %v1517_v12  ;;  %889 = vmatmul.mubr.bf16.vlgmr.msra.gmra.mxu1 %v1517_v12 }
  0x46   :  { %898 = vmatpush1.bf16.msra.mxu0 %v1180_v15  ;;  %939 = vmatpush1.bf16.msra.mxu1 %v1182_v16  ;;  %v159_v15 = vld [vmem:[%s1736_s1 + $0x3b8] sm:$0xff]  ;;  %v1244_v16 = vcombine.low %v162_v3, %v166_v4  ;;  %v1188_v4 = vcombine.low %v106_v60, %v110_v61 }
  0x47   :  { %899 = vmatprep.subr.bf16.mxu0 %v1173_v17  ;;  %940 = vmatprep.subr.bf16.mxu1 %v1175_v18  ;;  %v1246_v17 = vcombine.low %v163_v5, %v167_v6  ;;  %v1237_v18 = vcombine.high %v154_v11, %v158_v13  ;;  %v1239_v53 = vcombine.high %v155_v14, %v159_v15  ;;  %v1008_v6 = vlaneseq }
  0x48   :  { %929 = vmatprep.mubr.bf16.mxu0 %v1391_v57  ;;  %970 = vmatprep.mubr.bf16.mxu1 %v1391_v57  ;;  %v67_v57 = vld [vmem:[%s1736_s1 + $0xd8] sm:$0xff] }
  0x49   :  { %v1151_v40 = vcombine.high %v67_v57, %v71_v36  ;;  %v1150_v46 = vcombine.low %v67_v57, %v71_v36  ;;  %v134_v57 = vld [vmem:[%s1736_s1 + $0x2f0] sm:$0xff]  ;;  %v131_v36 = vld [vmem:[%s1736_s1 + $0x2d8] sm:$0xff] }
  0x4a   :  { %900 = vmatpush1.bf16.msra.mxu0 %v1172_v22  ;;  %941 = vmatpush1.bf16.msra.mxu1 %v1174_v23  ;;  %v151_v22 = vld [vmem:[%s1736_s1 + $0x378] sm:$0xff]  ;;  %v1236_v23 = vcombine.low %v154_v11, %v158_v13 }
  0x4b   :  { %901 = vmatprep.subr.bf16.mxu0 %v1165_v24  ;;  %942 = vmatprep.subr.bf16.mxu1 %v1167_v25  ;;  %v1238_v24 = vcombine.low %v155_v14, %v159_v15  ;;  %v1229_v25 = vcombine.high %v146_v19, %v150_v20  ;;  %v1231_v26 = vcombine.high %v147_v21, %v151_v22 }
  0x4e   :  { %902 = vmatpush1.bf16.msra.mxu0 %v1164_v30  ;;  %943 = vmatpush1.bf16.msra.mxu1 %v1166_v31  ;;  %v143_v30 = vld [vmem:[%s1736_s1 + $0x338] sm:$0xff]  ;;  %v1228_v31 = vcombine.low %v146_v19, %v150_v20 }
  0x4f   :  { %903 = vmatprep.subr.bf16.mxu0 %v1157_v32  ;;  %944 = vmatprep.subr.bf16.mxu1 %v1159_v33  ;;  %v1230_v32 = vcombine.low %v147_v21, %v151_v22  ;;  %v1221_v33 = vcombine.high %v138_v27, %v142_v28  ;;  %v1223_v34 = vcombine.high %v139_v29, %v143_v30 }
  0x52   :  { %904 = vmatpush1.bf16.msra.mxu0 %v1156_v37  ;;  %945 = vmatpush1.bf16.msra.mxu1 %v1158_v38  ;;  %v135_v37 = vld [vmem:[%s1736_s1 + $0x2f8] sm:$0xff]  ;;  %v1220_v38 = vcombine.low %v138_v27, %v142_v28 }
  0x53   :  { %905 = vmatprep.subr.bf16.mxu0 %v1149_v39  ;;  %946 = vmatprep.subr.bf16.mxu1 %v1151_v40  ;;  %v1222_v39 = vcombine.low %v139_v29, %v143_v30  ;;  %v1213_v40 = vcombine.high %v130_v35, %v134_v57  ;;  %v1215_v41 = vcombine.high %v131_v36, %v135_v37 }
  0x56   :  { %906 = vmatpush1.bf16.msra.mxu0 %v1148_v45  ;;  %947 = vmatpush1.bf16.msra.mxu1 %v1150_v46  ;;  %v127_v45 = vld [vmem:[%s1736_s1 + $0x2b8] sm:$0xff]  ;;  %v1212_v46 = vcombine.low %v130_v35, %v134_v57 }
  0x57   :  { %907 = vmatprep.subr.bf16.mxu0 %v1141_v47  ;;  %948 = vmatprep.subr.bf16.mxu1 %v1143_v48  ;;  %v1214_v47 = vcombine.low %v131_v36, %v135_v37  ;;  %v1205_v48 = vcombine.high %v122_v42, %v126_v43  ;;  %v1207_v49 = vcombine.high %v123_v44, %v127_v45 }
  0x5a   :  { %908 = vmatpush1.bf16.msra.mxu0 %v1140_v54  ;;  %949 = vmatpush1.bf16.msra.mxu1 %v1142_v55  ;;  %v119_v54 = vld [vmem:[%s1736_s1 + $0x278] sm:$0xff]  ;;  %v1204_v55 = vcombine.low %v122_v42, %v126_v43 }
  0x5b   :  { %909 = vmatprep.subr.bf16.mxu0 %v1133_v56  ;;  %950 = vmatprep.subr.bf16.mxu1 %v1135_v58  ;;  %v1206_v56 = vcombine.low %v123_v44, %v127_v45  ;;  %v1197_v58 = vcombine.high %v114_v50, %v118_v51  ;;  %v1199_v59 = vcombine.high %v115_v52, %v119_v54 }
  0x5e   :  { %910 = vmatpush1.bf16.msra.mxu0 %v1132_v63  ;;  %951 = vmatpush1.bf16.msra.mxu1 %v1134_v0  ;;  %v111_v63 = vld [vmem:[%s1736_s1 + $0x238] sm:$0xff]  ;;  %v1196_v0 = vcombine.low %v114_v50, %v118_v51 }
  0x5f   :  { %911 = vmatprep.subr.bf16.mxu0 %v1125_v1  ;;  %952 = vmatprep.subr.bf16.mxu1 %v1127_v2  ;;  %v1198_v1 = vcombine.low %v115_v52, %v119_v54  ;;  %v1189_v2 = vcombine.high %v106_v60, %v110_v61  ;;  %v1191_v3 = vcombine.high %v107_v62, %v111_v63 }
  0x60   :  { %v1190_v5 = vcombine.low %v107_v62, %v111_v63 }
  0x62   :  { %912 = vmatpush1.bf16.msra.mxu0 %v1124_v7  ;;  %953 = vmatpush1.bf16.msra.mxu1 %v1126_v8  ;;  %v1699_v7 = vshrl.u32 %v1008_v6, 7 }
  0x63   :  { %913 = vmatprep.subr.bf16.mxu0 %v1245_v9  ;;  %954 = vmatprep.subr.bf16.mxu1 %v1247_v10  ;;  %v1006_v9 = vld [vmem:[%s1738_s2] sm:$0xff] }
  0x64   :  { %v1010_v8 = vsub.s32 0, %v1699_v7  ;;  %v1018_v10 = vsub.s32 2, %v1699_v7  ;;  %v1014_v11 = vsub.s32 1, %v1699_v7  ;;  %v1022_v13 = vsub.s32 3, %v1699_v7 }
  0x65   :  { %v1038_v50 = vsub.s32 7, %v1699_v7 }
  0x66   :  { %914 = vmatpush2.bf16.msra.mxu0 %v1244_v16  ;;  %955 = vmatpush2.bf16.msra.mxu1 %v1246_v17  ;;  %v1011_v14 = vrot.slane %v1006_v9, %v1010_v8  ;;  %v1019_v15 = vrot.slane %v1006_v9, %v1018_v10  ;;  %v1015_v16 = vrot.slane %v1006_v9, %v1014_v11 }
  0x67   :  { %915 = vmatprep.subr.bf16.mxu0 %v1237_v18  ;;  %956 = vmatprep.subr.bf16.mxu1 %v1239_v53 }
  0x6a   :  { %916 = vmatpush2.bf16.msra.mxu0 %v1236_v23  ;;  %957 = vmatpush2.bf16.msra.mxu1 %v1238_v24 }
  0x6b   :  { %917 = vmatprep.subr.bf16.mxu0 %v1229_v25  ;;  %958 = vmatprep.subr.bf16.mxu1 %v1231_v26 }
  0x6e   :  { %918 = vmatpush2.bf16.msra.mxu0 %v1228_v31  ;;  %959 = vmatpush2.bf16.msra.mxu1 %v1230_v32 }
  0x6f   :  { %919 = vmatprep.subr.bf16.mxu0 %v1221_v33  ;;  %960 = vmatprep.subr.bf16.mxu1 %v1223_v34 }
  0x72   :  { %920 = vmatpush2.bf16.msra.mxu0 %v1220_v38  ;;  %961 = vmatpush2.bf16.msra.mxu1 %v1222_v39 }
  0x73   :  { %921 = vmatprep.subr.bf16.mxu0 %v1213_v40  ;;  %962 = vmatprep.subr.bf16.mxu1 %v1215_v41 }
  0x76   :  { %922 = vmatpush2.bf16.msra.mxu0 %v1212_v46  ;;  %963 = vmatpush2.bf16.msra.mxu1 %v1214_v47  ;;  %v1026_v47 = vsub.s32 4, %v1699_v7 }
  0x77   :  { %923 = vmatprep.subr.bf16.mxu0 %v1205_v48  ;;  %964 = vmatprep.subr.bf16.mxu1 %v1207_v49  ;;  %v1034_v48 = vsub.s32 6, %v1699_v7  ;;  %v1030_v49 = vsub.s32 5, %v1699_v7 }
  0x78   :  { %v1027_v51 = vrot.slane %v1006_v9, %v1026_v47 }
  0x79   :  { %v1035_v52 = vrot.slane %v1006_v9, %v1034_v48  ;;  %v1031_v54 = vrot.slane %v1006_v9, %v1030_v49 }
  0x7a   :  { %924 = vmatpush2.bf16.msra.mxu0 %v1204_v55  ;;  %965 = vmatpush2.bf16.msra.mxu1 %v1206_v56  ;;  %v1039_v56 = vrot.slane %v1006_v9, %v1038_v50 }
  0x7b   :  { %925 = vmatprep.subr.bf16.mxu0 %v1197_v58  ;;  %966 = vmatprep.subr.bf16.mxu1 %v1199_v59 }
  0x7e   :  { %926 = vmatpush2.bf16.msra.mxu0 %v1196_v0  ;;  %967 = vmatpush2.bf16.msra.mxu1 %v1198_v1 }
  0x7f   :  { %927 = vmatprep.subr.bf16.mxu0 %v1189_v2  ;;  %968 = vmatprep.subr.bf16.mxu1 %v1191_v3 }
  0x82   :  { %928 = vmatpush2.bf16.msra.mxu0 %v1188_v4  ;;  %969 = vmatpush2.bf16.msra.mxu1 %v1190_v5 }
  0x85   :  { %930 = vmatmul.mubr.bf16.vlgmr.msra.gmra.mxu0 %v1517_v12  ;;  %971 = vmatmul.mubr.bf16.vlgmr.msra.gmra.mxu1 %v1517_v12  ;;  %v1023_v12 = vrot.slane %v1006_v9, %v1022_v13 }
 0x105   :  { %v849_v17 = vpop.f32.mrf.mxu0  ;;  %v890_v53 = vpop.f32.mrf.mxu1 }
 0x106   :  { %v1048_v18 = vadd.f32 %v1011_v14, %v849_v17  ;;  %v1050_v19 = vadd.f32 %v1019_v15, %v890_v53 }
 0x107   :  { %v851_v20 = vpop.f32.mrf.mxu0  ;;  %v892_v23 = vpop.f32.mrf.mxu1 }
 0x108   :  { %v1064_v21 = vmin.f32 %v1048_v18, 0.0  ;;  %v1049_v22 = vadd.f32 %v1015_v16, %v851_v20  ;;  %v1066_v24 = vmin.f32 %v1050_v19, 0.0  ;;  %v1051_v25 = vadd.f32 %v1023_v12, %v892_v23 }
 0x109   :  { %v853_v26 = vpop.f32.mrf.mxu0  ;;  %v894_v29 = vpop.f32.mrf.mxu1  ;;  %vm1056_vm0 = vcmp.gt.f32.partialorder %v1048_v18, 0.0  ;;  %vm1058_vm1 = vcmp.gt.f32.partialorder %v1050_v19, 0.0 }
 0x10a   :  { %v1072_v27 = vmul.f32 1.442695, %v1064_v21  ;;  %v1065_v28 = vmin.f32 %v1049_v22, 0.0  ;;  %v1076_v30 = vmul.f32 1.442695, %v1066_v24  ;;  %v1067_v31 = vmin.f32 %v1051_v25, 0.0 }
 0x10b   :  { %v854_v32 = vpop.f32.mrf.mxu0  ;;  %v895_v34 = vpop.f32.mrf.mxu1  ;;  %vm1057_vm2 = vcmp.gt.f32.partialorder %v1049_v22, 0.0  ;;  %vm1059_vm3 = vcmp.gt.f32.partialorder %v1051_v25, 0.0 }
 0x10c   :  { %1258 = vpow2.f32 %v1072_v27  ;;  %v1074_v33 = vmul.f32 1.442695, %v1065_v28  ;;  %v1078_v35 = vmul.f32 1.442695, %v1067_v31 }
 0x10d   :  { %1260 = vpow2.f32 %v1076_v30 }
 0x10e   :  { %1262 = vpow2.f32 %v1074_v33 }
 0x10f   :  { %1264 = vpow2.f32 %v1078_v35 }
 0x119   :  { %v1259_v57 = vpop.eup %1258 }
 0x11a   :  { %v1261_v36 = vpop.eup %1260  ;;  %v1248_v37 = vadd.f32 -1.0, %v1259_v57 }
 0x11b   :  { %v1263_v38 = vpop.eup %1262  ;;  %v1250_v39 = vadd.f32 -1.0, %v1261_v36 }
 0x11c   :  { %v1265_v40 = vpop.eup %1264  ;;  %v1096_v41 = vsel %vm1056_vm0, %v1048_v18, %v1248_v37  ;;  %v1249_v42 = vadd.f32 -1.0, %v1263_v38 }
 0x11d   :  { %1104 = vst [vmem:[%s1739_s3] sm:$0xff] %v1096_v41  ;;  %v1098_v43 = vsel %vm1058_vm1, %v1050_v19, %v1250_v39  ;;  %v1251_v44 = vadd.f32 -1.0, %v1265_v40 }
 0x11e   :  { %1106 = vst [vmem:[%s1739_s3 + $0x10] sm:$0xff] %v1098_v43  ;;  %v1097_v45 = vsel %vm1057_vm2, %v1049_v22, %v1249_v42 }
 0x11f   :  { %1105 = vst [vmem:[%s1739_s3 + $0x8] sm:$0xff] %v1097_v45  ;;  %v1099_v46 = vsel %vm1059_vm3, %v1051_v25, %v1251_v44 }
 0x120   :  { %1107 = vst [vmem:[%s1739_s3 + $0x18] sm:$0xff] %v1099_v46 }
 0x145   :  { %v931_v55 = vpop.f32.mrf.mxu0  ;;  %v972_v59 = vpop.f32.mrf.mxu1 }
 0x146   :  { %v1052_v58 = vadd.f32 %v1027_v51, %v931_v55  ;;  %v1054_v60 = vadd.f32 %v1035_v52, %v972_v59 }
 0x147   :  { %v933_v61 = vpop.f32.mrf.mxu0  ;;  %v974_v0 = vpop.f32.mrf.mxu1 }
 0x148   :  { %v1068_v62 = vmin.f32 %v1052_v58, 0.0  ;;  %v1053_v63 = vadd.f32 %v1031_v54, %v933_v61  ;;  %v1070_v1 = vmin.f32 %v1054_v60, 0.0  ;;  %v1055_v2 = vadd.f32 %v1039_v56, %v974_v0 }
 0x149   :  { %v935_v3 = vpop.f32.mrf.mxu0  ;;  %v976_v6 = vpop.f32.mrf.mxu1  ;;  %vm1060_vm4 = vcmp.gt.f32.partialorder %v1052_v58, 0.0  ;;  %vm1062_vm5 = vcmp.gt.f32.partialorder %v1054_v60, 0.0 }
 0x14a   :  { %v1080_v4 = vmul.f32 1.442695, %v1068_v62  ;;  %v1069_v5 = vmin.f32 %v1053_v63, 0.0  ;;  %v1084_v8 = vmul.f32 1.442695, %v1070_v1  ;;  %v1071_v7 = vmin.f32 %v1055_v2, 0.0 }
 0x14b   :  { %v936_v10 = vpop.f32.mrf.mxu0  ;;  %v977_v13 = vpop.f32.mrf.mxu1  ;;  %vm1061_vm6 = vcmp.gt.f32.partialorder %v1053_v63, 0.0  ;;  %vm1063_vm7 = vcmp.gt.f32.partialorder %v1055_v2, 0.0 }
 0x14c   :  { %1266 = vpow2.f32 %v1080_v4  ;;  %v1082_v11 = vmul.f32 1.442695, %v1069_v5  ;;  %v1086_v9 = vmul.f32 1.442695, %v1071_v7 }
 0x14d   :  { %1268 = vpow2.f32 %v1084_v8 }
 0x14e   :  { %1270 = vpow2.f32 %v1082_v11 }
 0x14f   :  { %1272 = vpow2.f32 %v1086_v9 }
 0x159   :  { %v1267_v14 = vpop.eup %1266 }
 0x15a   :  { %v1269_v15 = vpop.eup %1268  ;;  %v1252_v16 = vadd.f32 -1.0, %v1267_v14 }
 0x15b   :  { %v1271_v17 = vpop.eup %1270  ;;  %v1254_v12 = vadd.f32 -1.0, %v1269_v15 }
 0x15c   :  { %v1273_v18 = vpop.eup %1272  ;;  %v1100_v53 = vsel %vm1060_vm4, %v1052_v58, %v1252_v16  ;;  %v1253_v19 = vadd.f32 -1.0, %v1271_v17 }
 0x15d   :  { %1108 = vst [vmem:[%s1739_s3 + $0x20] sm:$0xff] %v1100_v53  ;;  %v1102_v20 = vsel %vm1062_vm5, %v1054_v60, %v1254_v12  ;;  %v1255_v21 = vadd.f32 -1.0, %v1273_v18 }
 0x15e   :  { %1110 = vst [vmem:[%s1739_s3 + $0x30] sm:$0xff] %v1102_v20  ;;  %v1101_v22 = vsel %vm1061_vm6, %v1053_v63, %v1253_v19 }
 0x15f   :  { %1109 = vst [vmem:[%s1739_s3 + $0x28] sm:$0xff] %v1101_v22  ;;  %v1103_v23 = vsel %vm1063_vm7, %v1055_v2, %v1255_v21 }
 0x160   :  { %1111 = vst [vmem:[%s1739_s3 + $0x38] sm:$0xff] %v1103_v23 }

</bundles_post_ra>
